<compile_context>
chip_gen: v7x
topology: tpu7x:2x2x1
jax: 0.10.0
libtpu: 0.0.40
codegen_flags: <defaults>
</compile_context>

<pallas_src>
import functools

import jax
import jax.numpy as jnp
import numpy as np
from jax.experimental import pallas as pl
from jax.experimental.pallas import tpu as pltpu

R = 2      # space-to-depth block size
D3 = 2     # conv3d output channels (D)
KS = 3     # kernel size (both convs)
CO = 4     # conv2d output channels (Co)
COP = 8    # conv2d output rows padded to a full sublane


def _make_pack_kernel(*, Z, Dout, TH, Wp):
    """Fused s2d-input -> conv3d -> conv2d kernel for one (batch, row-tile) step."""
    Cm = Dout * Z              # conv2d input channels (24)
    M = TH * Wp                # output spatial positions in this tile (lane axis)
    M2 = (TH + 2) * Wp         # y positions needed by conv2d (1 halo row each side)

    def kernel(x_ref, w3_ref, b3_ref, w2_ref, b2_ref, ml_ref, mr_ref, o_ref, y_ref):
        t = pl.program_id(1)
        last_t = pl.num_programs(1) - 1

        mask_l = ml_ref[...]                      # (1, M2): 0 where w == 0
        mask_r = mr_ref[...]                      # (1, M2): 0 where w == Wp - 1

        # ----------------- stage 1: conv3d (single input channel) -----------------
        # y[d*Z+z, yh*Wp+yw], yh in [0, TH+2)  <->  global y row t*TH - 1 + yh.
        accs = [jnp.full((Z, M2), b3_ref[d], dtype=jnp.float32) for d in range(Dout)]
        for ki in range(KS):
            for kj in range(KS):
                # one load per spatial tap, reused over dz (3x) and d (Dout x)
                s3 = ki * Wp + kj
                slab = x_ref[0, 0, :, s3:s3 + M2]          # (Z+2, M2)
                if kj == 0:
                    slab = slab * mask_l                    # conv3d left  W edge -> 0
                elif kj == KS - 1:
                    slab = slab * mask_r                    # conv3d right W edge -> 0
                for dz in range(KS):
                    sub = slab[dz:dz + Z]
                    for d in range(Dout):
                        w = w3_ref[d * KS**3 + dz * KS**2 + ki * KS + kj]
                        accs[d] = accs[d] + w * sub
        for d in range(Dout):
            y_ref[d * Z:(d + 1) * Z, :] = accs[d]

        # conv2d sees zeros outside the Hp x Wp image: blank the H halo rows that
        # fall outside the image (only the first / last row tile has such rows).
        @pl.when(t == 0)
        def _zero_top():
            y_ref[:, 0:Wp] = jnp.zeros((Cm, Wp), jnp.float32)

        @pl.when(t == last_t)
        def _zero_bottom():
            y_ref[:, (TH + 1) * Wp:M2] = jnp.zeros((Cm, Wp), jnp.float32)

        # ------------- stage 2: conv2d as 9 accumulated MXU matmuls ---------------
        zcol = jnp.zeros((Cm, 1), jnp.float32)
        acc = [jnp.zeros((COP, M), jnp.float32) for _ in range(KS)]   # grouped by kj2
        for ki2 in range(KS):
            for kj2 in range(KS):
                s = ki2 * Wp + kj2 - 1
                if s < 0:                                   # corner tap (0, 0)
                    cols = jnp.concatenate([zcol, y_ref[:, 0:M - 1]], axis=1)
                elif s + M > M2:                            # corner tap (2, 2)
                    cols = jnp.concatenate([y_ref[:, s:M2], zcol], axis=1)
                else:
                    cols = y_ref[:, s:s + M]                # (Cm, M), lane dense
                acc[kj2] = acc[kj2] + jnp.dot(
                    w2_ref[ki2 * KS + kj2], cols, preferred_element_type=jnp.float32)

        out = (acc[1]
               + mask_l[:, :M] * acc[0]                     # kills ow == 0 taps
               + mask_r[:, :M] * acc[2]                     # kills ow == Wp-1 taps
               + b2_ref[...])
        o_ref[0, 0] = out

    return kernel


def _pick_tile_h(Hp, Wp, Z, Dout, *, budget_bytes=12 * 1024 * 1024):
    """Largest divisor of Hp whose per-step VMEM working set fits the budget
    (conservative for v7x: 64 MiB physical / 32 MiB scoped, double buffering)."""
    Cm = Dout * Z
    budget = budget_bytes // 4                              # f32 elements
    for th in range(Hp, 0, -1):
        if Hp % th:
            continue
        m, m2 = th * Wp, (th + 2) * Wp
        est = (2 * (Z + 2) * ((th + 4) * Wp + 2)            # double-buffered input tile
               + 2 * COP * m                                # double-buffered output tile
               + 2 * Cm * m2                                # y scratch + conv3d accum
               + (Cm + 3 * COP) * m)                        # conv2d cols + accumulators
        if est <= budget:
            return th
    return 1


def pack_forward(x, params, *, tile_h=None):
    """Pallas TPU forward for Pack: SpaceToDepth -> Conv3d -> view -> Conv2d."""
    w3, b3, w2, b2 = params
    N, C, H, W = x.shape
    assert H % R == 0 and W % R == 0
    Hp, Wp = H // R, W // R
    Z = C * R * R                       # conv3d depth (12 for C=3)
    Dout = b3.shape[0]                  # conv3d output channels (2)
    Cm = Dout * Z                       # conv2d input channels (24)
    Co = w2.shape[0]                    # conv2d output channels (4)

    TH = tile_h if tile_h is not None else _pick_tile_h(Hp, Wp, Z, Dout)
    assert Hp % TH == 0, "tile_h must divide H // R"
    n_t = Hp // TH
    M, M2 = TH * Wp, (TH + 2) * Wp
    Wflat = (TH + 4) * Wp + 2

    # ---- layout glue in JAX (one structured copy; no 9x im2col, no y round trip) ----
    # SpaceToDepth: channel = (bi*R + bj)*C + c  (matches torch permute order)
    s2d = (x.reshape(N, C, Hp, R, Wp, R)
             .transpose(0, 3, 5, 1, 2, 4)
             .reshape(N, Z, Hp, Wp).astype(jnp.float32))
    # depth pad 1 (conv3d) and H pad 2 (conv3d + conv2d halo); W edges handled in-kernel.
    xpad = jnp.pad(s2d, ((0, 0), (1, 1), (2, 2), (0, 0)))
    # cut overlapping row tiles (2-row halo) and flatten spatial onto the lane axis,
    # with one zero guard lane on each end so every conv tap is a contiguous slice.
    tiles = [jax.lax.slice_in_dim(xpad, t * TH, t * TH + TH + 4, axis=2)
             for t in range(n_t)]
    xf = jnp.stack(tiles, axis=1).reshape(N, n_t, Z + 2, (TH + 4) * Wp)
    xf = jnp.pad(xf, ((0, 0), (0, 0), (0, 0), (1, 1)))      # lane guards -> Wflat

    w3f = w3.reshape(-1).astype(jnp.float32)                # (Dout*27,)  SMEM scalars
    b3f = b3.astype(jnp.float32)                            # (Dout,)
    # per-tap conv2d weights, output rows padded to a full sublane (8)
    w2t = jnp.zeros((KS * KS, COP, Cm), jnp.float32)
    w2t = w2t.at[:, :Co, :].set(
        w2.astype(jnp.float32).transpose(2, 3, 0, 1).reshape(KS * KS, Co, Cm))
    b2f = jnp.zeros((COP, 1), jnp.float32).at[:Co, 0].set(b2.astype(jnp.float32))

    # {0,1} masks killing conv taps that fall outside the W extent of the image
    col = jnp.arange(M2, dtype=jnp.int32) % Wp
    mask_l = (col != 0).astype(jnp.float32)[None, :]        # (1, M2)
    mask_r = (col != Wp - 1).astype(jnp.float32)[None, :]   # (1, M2)

    kernel = _make_pack_kernel(Z=Z, Dout=Dout, TH=TH, Wp=Wp)
    out = pl.pallas_call(
        kernel,
        out_shape=jax.ShapeDtypeStruct((N, n_t, COP, M), jnp.float32),
        grid=(N, n_t),
        in_specs=[
            pl.BlockSpec((1, 1, Z + 2, Wflat), lambda n, t: (n, t, 0, 0)),
            pl.BlockSpec(memory_space=pltpu.MemorySpace.SMEM),   # w3 scalars
            pl.BlockSpec(memory_space=pltpu.MemorySpace.SMEM),   # b3 scalars
            pl.BlockSpec((KS * KS, COP, Cm), lambda n, t: (0, 0, 0)),
            pl.BlockSpec((COP, 1), lambda n, t: (0, 0)),
            pl.BlockSpec((1, M2), lambda n, t: (0, 0)),
            pl.BlockSpec((1, M2), lambda n, t: (0, 0)),
        ],
        out_specs=pl.BlockSpec((1, 1, COP, M), lambda n, t: (n, t, 0, 0)),
        scratch_shapes=[pltpu.VMEM((Cm, M2), jnp.float32)],      # y lives only in VMEM
        compiler_params=pltpu.CompilerParams(
            dimension_semantics=("parallel", "parallel")),
    )(xf, w3f, b3f, w2t, b2f, mask_l, mask_r)

    # (N, n_t, COP, TH*Wp) -> (N, Co, Hp, Wp)   (small output-side layout glue)
    out = out.transpose(0, 2, 1, 3).reshape(N, COP, Hp, Wp)
    return out[:, :Co]


def pack_reference(x, params):
    """Pure-JAX reference (lax conv) matching the PyTorch module semantics."""
    w3, b3, w2, b2 = params
    N, C, H, W = x.shape
    Hp, Wp = H // R, W // R
    s2d = (x.reshape(N, C, Hp, R, Wp, R)
             .transpose(0, 3, 5, 1, 2, 4)
             .reshape(N, C * R * R, Hp, Wp))
    v = s2d[:, None]                                # (N, 1, Z, Hp, Wp)
    y = jax.lax.conv_general_dilated(
        v, w3, window_strides=(1, 1, 1), padding=[(1, 1)] * 3,
        dimension_numbers=('NCDHW', 'OIDHW', 'NCDHW'),
        precision=jax.lax.Precision.HIGHEST)
    y = y + b3[None, :, None, None, None]
    y = y.reshape(N, -1, Hp, Wp)
    z = jax.lax.conv_general_dilated(
        y, w2, window_strides=(1, 1), padding=[(1, 1), (1, 1)],
        dimension_numbers=('NCHW', 'OIHW', 'NCHW'),
        precision=jax.lax.Precision.HIGHEST)
    z = z + b2[None, :, None, None]
    return z


if __name__ == "__main__":
    key = jax.random.PRNGKey(0)
    k_w3, k_b3, k_w2, k_b2, k_x1, k_x2 = jax.random.split(key, 6)

    Cin_mid = R * R * 3 * D3                        # 24
    # Deterministic synthetic parameters (shapes from Pack.__init__).
    w3 = jax.random.normal(k_w3, (D3, 1, KS, KS, KS), jnp.float32) / np.sqrt(KS**3)
    b3 = 0.1 * jax.random.normal(k_b3, (D3,), jnp.float32)
    w2 = jax.random.normal(k_w2, (CO, Cin_mid, KS, KS), jnp.float32) / np.sqrt(Cin_mid * KS * KS)
    b2 = 0.1 * jax.random.normal(k_b2, (CO,), jnp.float32)
    params = (w3, b3, w2, b2)

    # Case 1: small input, single row tile per batch element (C must be 3).
    x1 = jax.random.normal(k_x1, (2, 3, 16, 16), jnp.float32)
    out1 = jax.block_until_ready(jax.jit(pack_forward)(x1, params))
    assert out1.shape == (2, CO, 16 // R, 16 // R), out1.shape
    np.testing.assert_allclose(np.asarray(out1), np.asarray(pack_reference(x1, params)),
                               rtol=2e-3, atol=2e-3)

    # Case 2: multiple row tiles (exercises the halo / image-boundary logic).
    x2 = jax.random.normal(k_x2, (2, 3, 32, 32), jnp.float32)
    fwd_tiled = jax.jit(functools.partial(pack_forward, tile_h=8))
    out2 = jax.block_until_ready(fwd_tiled(x2, params))
    assert out2.shape == (2, CO, 32 // R, 32 // R), out2.shape
    np.testing.assert_allclose(np.asarray(out2), np.asarray(pack_reference(x2, params)),
                               rtol=2e-3, atol=2e-3)

    print("KERNEL_OK")
</pallas_src>

<mosaic_0001>
module attributes {stable_mosaic.version = 11 : i64} {
  func.func @kernel(%arg0: i32, %arg1: i32, %arg2: memref<1x1x14x98xf32, #tpu.memory_space<vmem>>, %arg3: memref<54xf32, #tpu.memory_space<smem>>, %arg4: memref<2xf32, #tpu.memory_space<smem>>, %arg5: memref<9x8x24xf32, #tpu.memory_space<vmem>>, %arg6: memref<8x1xf32, #tpu.memory_space<vmem>>, %arg7: memref<1x80xf32, #tpu.memory_space<vmem>>, %arg8: memref<1x80xf32, #tpu.memory_space<vmem>>, %arg9: memref<1x1x8x64xf32, #tpu.memory_space<vmem>>, %arg10: memref<24x80xf32, #tpu.memory_space<vmem>>) attributes {dimension_semantics = [#tpu.dimension_semantics<parallel>, #tpu.dimension_semantics<parallel>], iteration_bounds = array<i64: 2, 1>, scalar_prefetch = 0 : i64, scratch_operands = 1 : i64, tpu.core_type = #tpu.core_type<tc>, window_params = [{transform_indices = @transform_0, window_bounds = array<i64: 1, 1, 14, 98>}, {transform_indices = @transform_1, window_bounds = array<i64: 54>}, {transform_indices = @transform_2, window_bounds = array<i64: 2>}, {pipeline_mode = #tpu.pipeline_mode<synchronous>, transform_indices = @transform_3, window_bounds = array<i64: 9, 8, 24>}, {pipeline_mode = #tpu.pipeline_mode<synchronous>, transform_indices = @transform_4, window_bounds = array<i64: 8, 1>}, {pipeline_mode = #tpu.pipeline_mode<synchronous>, transform_indices = @transform_5, window_bounds = array<i64: 1, 80>}, {pipeline_mode = #tpu.pipeline_mode<synchronous>, transform_indices = @transform_6, window_bounds = array<i64: 1, 80>}, {transform_indices = @transform_7, window_bounds = array<i64: 1, 1, 8, 64>}]} {
    %c0 = arith.constant 0 : index
    %c0_0 = arith.constant 0 : index
    %0 = vector.load %arg7[%c0, %c0_0] : memref<1x80xf32, #tpu.memory_space<vmem>>, vector<1x80xf32>
    %c0_1 = arith.constant 0 : index
    %c0_2 = arith.constant 0 : index
    %1 = vector.load %arg8[%c0_1, %c0_2] : memref<1x80xf32, #tpu.memory_space<vmem>>, vector<1x80xf32>
    %c0_3 = arith.constant 0 : index
    %2 = memref.load %arg4[%c0_3] : memref<2xf32, #tpu.memory_space<smem>>
    %3 = vector.broadcast %2 : f32 to vector<12x80xf32>
    %c1 = arith.constant 1 : index
    %4 = memref.load %arg4[%c1] : memref<2xf32, #tpu.memory_space<smem>>
    %5 = vector.broadcast %4 : f32 to vector<12x80xf32>
    %c0_4 = arith.constant 0 : index
    %c0_5 = arith.constant 0 : index
    %c0_6 = arith.constant 0 : index
    %c0_7 = arith.constant 0 : index
    %6 = vector.load %arg2[%c0_4, %c0_5, %c0_6, %c0_7] : memref<1x1x14x98xf32, #tpu.memory_space<vmem>>, vector<1x1x14x80xf32>
    %7 = vector.shape_cast %6 : vector<1x1x14x80xf32> to vector<14x80xf32>
    %8 = vector.broadcast %0 : vector<1x80xf32> to vector<14x80xf32>
    %9 = arith.mulf %7, %8 : vector<14x80xf32>
    %10 = vector.extract_strided_slice %9 {offsets = [0, 0], sizes = [12, 80], strides = [1, 1]} : vector<14x80xf32> to vector<12x80xf32>
    %c0_8 = arith.constant 0 : index
    %11 = memref.load %arg3[%c0_8] : memref<54xf32, #tpu.memory_space<smem>>
    %12 = vector.broadcast %11 : f32 to vector<12x80xf32>
    %13 = arith.mulf %12, %10 : vector<12x80xf32>
    %14 = arith.addf %3, %13 : vector<12x80xf32>
    %c27 = arith.constant 27 : index
    %15 = memref.load %arg3[%c27] : memref<54xf32, #tpu.memory_space<smem>>
    %16 = vector.broadcast %15 : f32 to vector<12x80xf32>
    %17 = arith.mulf %16, %10 : vector<12x80xf32>
    %18 = arith.addf %5, %17 : vector<12x80xf32>
    %19 = vector.extract_strided_slice %9 {offsets = [1, 0], sizes = [12, 80], strides = [1, 1]} : vector<14x80xf32> to vector<12x80xf32>
    %c9 = arith.constant 9 : index
    %20 = memref.load %arg3[%c9] : memref<54xf32, #tpu.memory_space<smem>>
    %21 = vector.broadcast %20 : f32 to vector<12x80xf32>
    %22 = arith.mulf %21, %19 : vector<12x80xf32>
    %23 = arith.addf %14, %22 : vector<12x80xf32>
    %c36 = arith.constant 36 : index
    %24 = memref.load %arg3[%c36] : memref<54xf32, #tpu.memory_space<smem>>
    %25 = vector.broadcast %24 : f32 to vector<12x80xf32>
    %26 = arith.mulf %25, %19 : vector<12x80xf32>
    %27 = arith.addf %18, %26 : vector<12x80xf32>
    %28 = vector.extract_strided_slice %9 {offsets = [2, 0], sizes = [12, 80], strides = [1, 1]} : vector<14x80xf32> to vector<12x80xf32>
    %c18 = arith.constant 18 : index
    %29 = memref.load %arg3[%c18] : memref<54xf32, #tpu.memory_space<smem>>
    %30 = vector.broadcast %29 : f32 to vector<12x80xf32>
    %31 = arith.mulf %30, %28 : vector<12x80xf32>
    %32 = arith.addf %23, %31 : vector<12x80xf32>
    %c45 = arith.constant 45 : index
    %33 = memref.load %arg3[%c45] : memref<54xf32, #tpu.memory_space<smem>>
    %34 = vector.broadcast %33 : f32 to vector<12x80xf32>
    %35 = arith.mulf %34, %28 : vector<12x80xf32>
    %36 = arith.addf %27, %35 : vector<12x80xf32>
    %c0_9 = arith.constant 0 : index
    %c0_10 = arith.constant 0 : index
    %c0_11 = arith.constant 0 : index
    %c1_12 = arith.constant 1 : index
    %37 = vector.load %arg2[%c0_9, %c0_10, %c0_11, %c1_12] : memref<1x1x14x98xf32, #tpu.memory_space<vmem>>, vector<1x1x14x80xf32>
    %38 = vector.shape_cast %37 : vector<1x1x14x80xf32> to vector<14x80xf32>
    %39 = vector.extract_strided_slice %38 {offsets = [0, 0], sizes = [12, 80], strides = [1, 1]} : vector<14x80xf32> to vector<12x80xf32>
    %c1_13 = arith.constant 1 : index
    %40 = memref.load %arg3[%c1_13] : memref<54xf32, #tpu.memory_space<smem>>
    %41 = vector.broadcast %40 : f32 to vector<12x80xf32>
    %42 = arith.mulf %41, %39 : vector<12x80xf32>
    %43 = arith.addf %32, %42 : vector<12x80xf32>
    %c28 = arith.constant 28 : index
    %44 = memref.load %arg3[%c28] : memref<54xf32, #tpu.memory_space<smem>>
    %45 = vector.broadcast %44 : f32 to vector<12x80xf32>
    %46 = arith.mulf %45, %39 : vector<12x80xf32>
    %47 = arith.addf %36, %46 : vector<12x80xf32>
    %48 = vector.extract_strided_slice %38 {offsets = [1, 0], sizes = [12, 80], strides = [1, 1]} : vector<14x80xf32> to vector<12x80xf32>
    %c10 = arith.constant 10 : index
    %49 = memref.load %arg3[%c10] : memref<54xf32, #tpu.memory_space<smem>>
    %50 = vector.broadcast %49 : f32 to vector<12x80xf32>
    %51 = arith.mulf %50, %48 : vector<12x80xf32>
    %52 = arith.addf %43, %51 : vector<12x80xf32>
    %c37 = arith.constant 37 : index
    %53 = memref.load %arg3[%c37] : memref<54xf32, #tpu.memory_space<smem>>
    %54 = vector.broadcast %53 : f32 to vector<12x80xf32>
    %55 = arith.mulf %54, %48 : vector<12x80xf32>
    %56 = arith.addf %47, %55 : vector<12x80xf32>
    %57 = vector.extract_strided_slice %38 {offsets = [2, 0], sizes = [12, 80], strides = [1, 1]} : vector<14x80xf32> to vector<12x80xf32>
    %c19 = arith.constant 19 : index
    %58 = memref.load %arg3[%c19] : memref<54xf32, #tpu.memory_space<smem>>
    %59 = vector.broadcast %58 : f32 to vector<12x80xf32>
    %60 = arith.mulf %59, %57 : vector<12x80xf32>
    %61 = arith.addf %52, %60 : vector<12x80xf32>
    %c46 = arith.constant 46 : index
    %62 = memref.load %arg3[%c46] : memref<54xf32, #tpu.memory_space<smem>>
    %63 = vector.broadcast %62 : f32 to vector<12x80xf32>
    %64 = arith.mulf %63, %57 : vector<12x80xf32>
    %65 = arith.addf %56, %64 : vector<12x80xf32>
    %c0_14 = arith.constant 0 : index
    %c0_15 = arith.constant 0 : index
    %c0_16 = arith.constant 0 : index
    %c2 = arith.constant 2 : index
    %66 = vector.load %arg2[%c0_14, %c0_15, %c0_16, %c2] : memref<1x1x14x98xf32, #tpu.memory_space<vmem>>, vector<1x1x14x80xf32>
    %67 = vector.shape_cast %66 : vector<1x1x14x80xf32> to vector<14x80xf32>
    %68 = vector.broadcast %1 : vector<1x80xf32> to vector<14x80xf32>
    %69 = arith.mulf %67, %68 : vector<14x80xf32>
    %70 = vector.extract_strided_slice %69 {offsets = [0, 0], sizes = [12, 80], strides = [1, 1]} : vector<14x80xf32> to vector<12x80xf32>
    %c2_17 = arith.constant 2 : index
    %71 = memref.load %arg3[%c2_17] : memref<54xf32, #tpu.memory_space<smem>>
    %72 = vector.broadcast %71 : f32 to vector<12x80xf32>
    %73 = arith.mulf %72, %70 : vector<12x80xf32>
    %74 = arith.addf %61, %73 : vector<12x80xf32>
    %c29 = arith.constant 29 : index
    %75 = memref.load %arg3[%c29] : memref<54xf32, #tpu.memory_space<smem>>
    %76 = vector.broadcast %75 : f32 to vector<12x80xf32>
    %77 = arith.mulf %76, %70 : vector<12x80xf32>
    %78 = arith.addf %65, %77 : vector<12x80xf32>
    %79 = vector.extract_strided_slice %69 {offsets = [1, 0], sizes = [12, 80], strides = [1, 1]} : vector<14x80xf32> to vector<12x80xf32>
    %c11 = arith.constant 11 : index
    %80 = memref.load %arg3[%c11] : memref<54xf32, #tpu.memory_space<smem>>
    %81 = vector.broadcast %80 : f32 to vector<12x80xf32>
    %82 = arith.mulf %81, %79 : vector<12x80xf32>
    %83 = arith.addf %74, %82 : vector<12x80xf32>
    %c38 = arith.constant 38 : index
    %84 = memref.load %arg3[%c38] : memref<54xf32, #tpu.memory_space<smem>>
    %85 = vector.broadcast %84 : f32 to vector<12x80xf32>
    %86 = arith.mulf %85, %79 : vector<12x80xf32>
    %87 = arith.addf %78, %86 : vector<12x80xf32>
    %88 = vector.extract_strided_slice %69 {offsets = [2, 0], sizes = [12, 80], strides = [1, 1]} : vector<14x80xf32> to vector<12x80xf32>
    %c20 = arith.constant 20 : index
    %89 = memref.load %arg3[%c20] : memref<54xf32, #tpu.memory_space<smem>>
    %90 = vector.broadcast %89 : f32 to vector<12x80xf32>
    %91 = arith.mulf %90, %88 : vector<12x80xf32>
    %92 = arith.addf %83, %91 : vector<12x80xf32>
    %c47 = arith.constant 47 : index
    %93 = memref.load %arg3[%c47] : memref<54xf32, #tpu.memory_space<smem>>
    %94 = vector.broadcast %93 : f32 to vector<12x80xf32>
    %95 = arith.mulf %94, %88 : vector<12x80xf32>
    %96 = arith.addf %87, %95 : vector<12x80xf32>
    %c0_18 = arith.constant 0 : index
    %c0_19 = arith.constant 0 : index
    %c0_20 = arith.constant 0 : index
    %c8 = arith.constant 8 : index
    %97 = vector.load %arg2[%c0_18, %c0_19, %c0_20, %c8] : memref<1x1x14x98xf32, #tpu.memory_space<vmem>>, vector<1x1x14x80xf32>
    %98 = vector.shape_cast %97 : vector<1x1x14x80xf32> to vector<14x80xf32>
    %99 = vector.broadcast %0 : vector<1x80xf32> to vector<14x80xf32>
    %100 = arith.mulf %98, %99 : vector<14x80xf32>
    %101 = vector.extract_strided_slice %100 {offsets = [0, 0], sizes = [12, 80], strides = [1, 1]} : vector<14x80xf32> to vector<12x80xf32>
    %c3 = arith.constant 3 : index
    %102 = memref.load %arg3[%c3] : memref<54xf32, #tpu.memory_space<smem>>
    %103 = vector.broadcast %102 : f32 to vector<12x80xf32>
    %104 = arith.mulf %103, %101 : vector<12x80xf32>
    %105 = arith.addf %92, %104 : vector<12x80xf32>
    %c30 = arith.constant 30 : index
    %106 = memref.load %arg3[%c30] : memref<54xf32, #tpu.memory_space<smem>>
    %107 = vector.broadcast %106 : f32 to vector<12x80xf32>
    %108 = arith.mulf %107, %101 : vector<12x80xf32>
    %109 = arith.addf %96, %108 : vector<12x80xf32>
    %110 = vector.extract_strided_slice %100 {offsets = [1, 0], sizes = [12, 80], strides = [1, 1]} : vector<14x80xf32> to vector<12x80xf32>
    %c12 = arith.constant 12 : index
    %111 = memref.load %arg3[%c12] : memref<54xf32, #tpu.memory_space<smem>>
    %112 = vector.broadcast %111 : f32 to vector<12x80xf32>
    %113 = arith.mulf %112, %110 : vector<12x80xf32>
    %114 = arith.addf %105, %113 : vector<12x80xf32>
    %c39 = arith.constant 39 : index
    %115 = memref.load %arg3[%c39] : memref<54xf32, #tpu.memory_space<smem>>
    %116 = vector.broadcast %115 : f32 to vector<12x80xf32>
    %117 = arith.mulf %116, %110 : vector<12x80xf32>
    %118 = arith.addf %109, %117 : vector<12x80xf32>
    %119 = vector.extract_strided_slice %100 {offsets = [2, 0], sizes = [12, 80], strides = [1, 1]} : vector<14x80xf32> to vector<12x80xf32>
    %c21 = arith.constant 21 : index
    %120 = memref.load %arg3[%c21] : memref<54xf32, #tpu.memory_space<smem>>
    %121 = vector.broadcast %120 : f32 to vector<12x80xf32>
    %122 = arith.mulf %121, %119 : vector<12x80xf32>
    %123 = arith.addf %114, %122 : vector<12x80xf32>
    %c48 = arith.constant 48 : index
    %124 = memref.load %arg3[%c48] : memref<54xf32, #tpu.memory_space<smem>>
    %125 = vector.broadcast %124 : f32 to vector<12x80xf32>
    %126 = arith.mulf %125, %119 : vector<12x80xf32>
    %127 = arith.addf %118, %126 : vector<12x80xf32>
    %c0_21 = arith.constant 0 : index
    %c0_22 = arith.constant 0 : index
    %c0_23 = arith.constant 0 : index
    %c9_24 = arith.constant 9 : index
    %128 = vector.load %arg2[%c0_21, %c0_22, %c0_23, %c9_24] : memref<1x1x14x98xf32, #tpu.memory_space<vmem>>, vector<1x1x14x80xf32>
    %129 = vector.shape_cast %128 : vector<1x1x14x80xf32> to vector<14x80xf32>
    %130 = vector.extract_strided_slice %129 {offsets = [0, 0], sizes = [12, 80], strides = [1, 1]} : vector<14x80xf32> to vector<12x80xf32>
    %c4 = arith.constant 4 : index
    %131 = memref.load %arg3[%c4] : memref<54xf32, #tpu.memory_space<smem>>
    %132 = vector.broadcast %131 : f32 to vector<12x80xf32>
    %133 = arith.mulf %132, %130 : vector<12x80xf32>
    %134 = arith.addf %123, %133 : vector<12x80xf32>
    %c31 = arith.constant 31 : index
    %135 = memref.load %arg3[%c31] : memref<54xf32, #tpu.memory_space<smem>>
    %136 = vector.broadcast %135 : f32 to vector<12x80xf32>
    %137 = arith.mulf %136, %130 : vector<12x80xf32>
    %138 = arith.addf %127, %137 : vector<12x80xf32>
    %139 = vector.extract_strided_slice %129 {offsets = [1, 0], sizes = [12, 80], strides = [1, 1]} : vector<14x80xf32> to vector<12x80xf32>
    %c13 = arith.constant 13 : index
    %140 = memref.load %arg3[%c13] : memref<54xf32, #tpu.memory_space<smem>>
    %141 = vector.broadcast %140 : f32 to vector<12x80xf32>
    %142 = arith.mulf %141, %139 : vector<12x80xf32>
    %143 = arith.addf %134, %142 : vector<12x80xf32>
    %c40 = arith.constant 40 : index
    %144 = memref.load %arg3[%c40] : memref<54xf32, #tpu.memory_space<smem>>
    %145 = vector.broadcast %144 : f32 to vector<12x80xf32>
    %146 = arith.mulf %145, %139 : vector<12x80xf32>
    %147 = arith.addf %138, %146 : vector<12x80xf32>
    %148 = vector.extract_strided_slice %129 {offsets = [2, 0], sizes = [12, 80], strides = [1, 1]} : vector<14x80xf32> to vector<12x80xf32>
    %c22 = arith.constant 22 : index
    %149 = memref.load %arg3[%c22] : memref<54xf32, #tpu.memory_space<smem>>
    %150 = vector.broadcast %149 : f32 to vector<12x80xf32>
    %151 = arith.mulf %150, %148 : vector<12x80xf32>
    %152 = arith.addf %143, %151 : vector<12x80xf32>
    %c49 = arith.constant 49 : index
    %153 = memref.load %arg3[%c49] : memref<54xf32, #tpu.memory_space<smem>>
    %154 = vector.broadcast %153 : f32 to vector<12x80xf32>
    %155 = arith.mulf %154, %148 : vector<12x80xf32>
    %156 = arith.addf %147, %155 : vector<12x80xf32>
    %c0_25 = arith.constant 0 : index
    %c0_26 = arith.constant 0 : index
    %c0_27 = arith.constant 0 : index
    %c10_28 = arith.constant 10 : index
    %157 = vector.load %arg2[%c0_25, %c0_26, %c0_27, %c10_28] : memref<1x1x14x98xf32, #tpu.memory_space<vmem>>, vector<1x1x14x80xf32>
    %158 = vector.shape_cast %157 : vector<1x1x14x80xf32> to vector<14x80xf32>
    %159 = vector.broadcast %1 : vector<1x80xf32> to vector<14x80xf32>
    %160 = arith.mulf %158, %159 : vector<14x80xf32>
    %161 = vector.extract_strided_slice %160 {offsets = [0, 0], sizes = [12, 80], strides = [1, 1]} : vector<14x80xf32> to vector<12x80xf32>
    %c5 = arith.constant 5 : index
    %162 = memref.load %arg3[%c5] : memref<54xf32, #tpu.memory_space<smem>>
    %163 = vector.broadcast %162 : f32 to vector<12x80xf32>
    %164 = arith.mulf %163, %161 : vector<12x80xf32>
    %165 = arith.addf %152, %164 : vector<12x80xf32>
    %c32 = arith.constant 32 : index
    %166 = memref.load %arg3[%c32] : memref<54xf32, #tpu.memory_space<smem>>
    %167 = vector.broadcast %166 : f32 to vector<12x80xf32>
    %168 = arith.mulf %167, %161 : vector<12x80xf32>
    %169 = arith.addf %156, %168 : vector<12x80xf32>
    %170 = vector.extract_strided_slice %160 {offsets = [1, 0], sizes = [12, 80], strides = [1, 1]} : vector<14x80xf32> to vector<12x80xf32>
    %c14 = arith.constant 14 : index
    %171 = memref.load %arg3[%c14] : memref<54xf32, #tpu.memory_space<smem>>
    %172 = vector.broadcast %171 : f32 to vector<12x80xf32>
    %173 = arith.mulf %172, %170 : vector<12x80xf32>
    %174 = arith.addf %165, %173 : vector<12x80xf32>
    %c41 = arith.constant 41 : index
    %175 = memref.load %arg3[%c41] : memref<54xf32, #tpu.memory_space<smem>>
    %176 = vector.broadcast %175 : f32 to vector<12x80xf32>
    %177 = arith.mulf %176, %170 : vector<12x80xf32>
    %178 = arith.addf %169, %177 : vector<12x80xf32>
    %179 = vector.extract_strided_slice %160 {offsets = [2, 0], sizes = [12, 80], strides = [1, 1]} : vector<14x80xf32> to vector<12x80xf32>
    %c23 = arith.constant 23 : index
    %180 = memref.load %arg3[%c23] : memref<54xf32, #tpu.memory_space<smem>>
    %181 = vector.broadcast %180 : f32 to vector<12x80xf32>
    %182 = arith.mulf %181, %179 : vector<12x80xf32>
    %183 = arith.addf %174, %182 : vector<12x80xf32>
    %c50 = arith.constant 50 : index
    %184 = memref.load %arg3[%c50] : memref<54xf32, #tpu.memory_space<smem>>
    %185 = vector.broadcast %184 : f32 to vector<12x80xf32>
    %186 = arith.mulf %185, %179 : vector<12x80xf32>
    %187 = arith.addf %178, %186 : vector<12x80xf32>
    %c0_29 = arith.constant 0 : index
    %c0_30 = arith.constant 0 : index
    %c0_31 = arith.constant 0 : index
    %c16 = arith.constant 16 : index
    %188 = vector.load %arg2[%c0_29, %c0_30, %c0_31, %c16] : memref<1x1x14x98xf32, #tpu.memory_space<vmem>>, vector<1x1x14x80xf32>
    %189 = vector.shape_cast %188 : vector<1x1x14x80xf32> to vector<14x80xf32>
    %190 = vector.broadcast %0 : vector<1x80xf32> to vector<14x80xf32>
    %191 = arith.mulf %189, %190 : vector<14x80xf32>
    %192 = vector.extract_strided_slice %191 {offsets = [0, 0], sizes = [12, 80], strides = [1, 1]} : vector<14x80xf32> to vector<12x80xf32>
    %c6 = arith.constant 6 : index
    %193 = memref.load %arg3[%c6] : memref<54xf32, #tpu.memory_space<smem>>
    %194 = vector.broadcast %193 : f32 to vector<12x80xf32>
    %195 = arith.mulf %194, %192 : vector<12x80xf32>
    %196 = arith.addf %183, %195 : vector<12x80xf32>
    %c33 = arith.constant 33 : index
    %197 = memref.load %arg3[%c33] : memref<54xf32, #tpu.memory_space<smem>>
    %198 = vector.broadcast %197 : f32 to vector<12x80xf32>
    %199 = arith.mulf %198, %192 : vector<12x80xf32>
    %200 = arith.addf %187, %199 : vector<12x80xf32>
    %201 = vector.extract_strided_slice %191 {offsets = [1, 0], sizes = [12, 80], strides = [1, 1]} : vector<14x80xf32> to vector<12x80xf32>
    %c15 = arith.constant 15 : index
    %202 = memref.load %arg3[%c15] : memref<54xf32, #tpu.memory_space<smem>>
    %203 = vector.broadcast %202 : f32 to vector<12x80xf32>
    %204 = arith.mulf %203, %201 : vector<12x80xf32>
    %205 = arith.addf %196, %204 : vector<12x80xf32>
    %c42 = arith.constant 42 : index
    %206 = memref.load %arg3[%c42] : memref<54xf32, #tpu.memory_space<smem>>
    %207 = vector.broadcast %206 : f32 to vector<12x80xf32>
    %208 = arith.mulf %207, %201 : vector<12x80xf32>
    %209 = arith.addf %200, %208 : vector<12x80xf32>
    %210 = vector.extract_strided_slice %191 {offsets = [2, 0], sizes = [12, 80], strides = [1, 1]} : vector<14x80xf32> to vector<12x80xf32>
    %c24 = arith.constant 24 : index
    %211 = memref.load %arg3[%c24] : memref<54xf32, #tpu.memory_space<smem>>
    %212 = vector.broadcast %211 : f32 to vector<12x80xf32>
    %213 = arith.mulf %212, %210 : vector<12x80xf32>
    %214 = arith.addf %205, %213 : vector<12x80xf32>
    %c51 = arith.constant 51 : index
    %215 = memref.load %arg3[%c51] : memref<54xf32, #tpu.memory_space<smem>>
    %216 = vector.broadcast %215 : f32 to vector<12x80xf32>
    %217 = arith.mulf %216, %210 : vector<12x80xf32>
    %218 = arith.addf %209, %217 : vector<12x80xf32>
    %c0_32 = arith.constant 0 : index
    %c0_33 = arith.constant 0 : index
    %c0_34 = arith.constant 0 : index
    %c17 = arith.constant 17 : index
    %219 = vector.load %arg2[%c0_32, %c0_33, %c0_34, %c17] : memref<1x1x14x98xf32, #tpu.memory_space<vmem>>, vector<1x1x14x80xf32>
    %220 = vector.shape_cast %219 : vector<1x1x14x80xf32> to vector<14x80xf32>
    %221 = vector.extract_strided_slice %220 {offsets = [0, 0], sizes = [12, 80], strides = [1, 1]} : vector<14x80xf32> to vector<12x80xf32>
    %c7 = arith.constant 7 : index
    %222 = memref.load %arg3[%c7] : memref<54xf32, #tpu.memory_space<smem>>
    %223 = vector.broadcast %222 : f32 to vector<12x80xf32>
    %224 = arith.mulf %223, %221 : vector<12x80xf32>
    %225 = arith.addf %214, %224 : vector<12x80xf32>
    %c34 = arith.constant 34 : index
    %226 = memref.load %arg3[%c34] : memref<54xf32, #tpu.memory_space<smem>>
    %227 = vector.broadcast %226 : f32 to vector<12x80xf32>
    %228 = arith.mulf %227, %221 : vector<12x80xf32>
    %229 = arith.addf %218, %228 : vector<12x80xf32>
    %230 = vector.extract_strided_slice %220 {offsets = [1, 0], sizes = [12, 80], strides = [1, 1]} : vector<14x80xf32> to vector<12x80xf32>
    %c16_35 = arith.constant 16 : index
    %231 = memref.load %arg3[%c16_35] : memref<54xf32, #tpu.memory_space<smem>>
    %232 = vector.broadcast %231 : f32 to vector<12x80xf32>
    %233 = arith.mulf %232, %230 : vector<12x80xf32>
    %234 = arith.addf %225, %233 : vector<12x80xf32>
    %c43 = arith.constant 43 : index
    %235 = memref.load %arg3[%c43] : memref<54xf32, #tpu.memory_space<smem>>
    %236 = vector.broadcast %235 : f32 to vector<12x80xf32>
    %237 = arith.mulf %236, %230 : vector<12x80xf32>
    %238 = arith.addf %229, %237 : vector<12x80xf32>
    %239 = vector.extract_strided_slice %220 {offsets = [2, 0], sizes = [12, 80], strides = [1, 1]} : vector<14x80xf32> to vector<12x80xf32>
    %c25 = arith.constant 25 : index
    %240 = memref.load %arg3[%c25] : memref<54xf32, #tpu.memory_space<smem>>
    %241 = vector.broadcast %240 : f32 to vector<12x80xf32>
    %242 = arith.mulf %241, %239 : vector<12x80xf32>
    %243 = arith.addf %234, %242 : vector<12x80xf32>
    %c52 = arith.constant 52 : index
    %244 = memref.load %arg3[%c52] : memref<54xf32, #tpu.memory_space<smem>>
    %245 = vector.broadcast %244 : f32 to vector<12x80xf32>
    %246 = arith.mulf %245, %239 : vector<12x80xf32>
    %247 = arith.addf %238, %246 : vector<12x80xf32>
    %c0_36 = arith.constant 0 : index
    %c0_37 = arith.constant 0 : index
    %c0_38 = arith.constant 0 : index
    %c18_39 = arith.constant 18 : index
    %248 = vector.load %arg2[%c0_36, %c0_37, %c0_38, %c18_39] : memref<1x1x14x98xf32, #tpu.memory_space<vmem>>, vector<1x1x14x80xf32>
    %249 = vector.shape_cast %248 : vector<1x1x14x80xf32> to vector<14x80xf32>
    %250 = vector.broadcast %1 : vector<1x80xf32> to vector<14x80xf32>
    %251 = arith.mulf %249, %250 : vector<14x80xf32>
    %252 = vector.extract_strided_slice %251 {offsets = [0, 0], sizes = [12, 80], strides = [1, 1]} : vector<14x80xf32> to vector<12x80xf32>
    %c8_40 = arith.constant 8 : index
    %253 = memref.load %arg3[%c8_40] : memref<54xf32, #tpu.memory_space<smem>>
    %254 = vector.broadcast %253 : f32 to vector<12x80xf32>
    %255 = arith.mulf %254, %252 : vector<12x80xf32>
    %256 = arith.addf %243, %255 : vector<12x80xf32>
    %c35 = arith.constant 35 : index
    %257 = memref.load %arg3[%c35] : memref<54xf32, #tpu.memory_space<smem>>
    %258 = vector.broadcast %257 : f32 to vector<12x80xf32>
    %259 = arith.mulf %258, %252 : vector<12x80xf32>
    %260 = arith.addf %247, %259 : vector<12x80xf32>
    %261 = vector.extract_strided_slice %251 {offsets = [1, 0], sizes = [12, 80], strides = [1, 1]} : vector<14x80xf32> to vector<12x80xf32>
    %c17_41 = arith.constant 17 : index
    %262 = memref.load %arg3[%c17_41] : memref<54xf32, #tpu.memory_space<smem>>
    %263 = vector.broadcast %262 : f32 to vector<12x80xf32>
    %264 = arith.mulf %263, %261 : vector<12x80xf32>
    %265 = arith.addf %256, %264 : vector<12x80xf32>
    %c44 = arith.constant 44 : index
    %266 = memref.load %arg3[%c44] : memref<54xf32, #tpu.memory_space<smem>>
    %267 = vector.broadcast %266 : f32 to vector<12x80xf32>
    %268 = arith.mulf %267, %261 : vector<12x80xf32>
    %269 = arith.addf %260, %268 : vector<12x80xf32>
    %270 = vector.extract_strided_slice %251 {offsets = [2, 0], sizes = [12, 80], strides = [1, 1]} : vector<14x80xf32> to vector<12x80xf32>
    %c26 = arith.constant 26 : index
    %271 = memref.load %arg3[%c26] : memref<54xf32, #tpu.memory_space<smem>>
    %272 = vector.broadcast %271 : f32 to vector<12x80xf32>
    %273 = arith.mulf %272, %270 : vector<12x80xf32>
    %274 = arith.addf %265, %273 : vector<12x80xf32>
    %c53 = arith.constant 53 : index
    %275 = memref.load %arg3[%c53] : memref<54xf32, #tpu.memory_space<smem>>
    %276 = vector.broadcast %275 : f32 to vector<12x80xf32>
    %277 = arith.mulf %276, %270 : vector<12x80xf32>
    %278 = arith.addf %269, %277 : vector<12x80xf32>
    %c0_42 = arith.constant 0 : index
    %c0_43 = arith.constant 0 : index
    %279 = vector.load %arg10[%c0_42, %c0_43] : memref<24x80xf32, #tpu.memory_space<vmem>>, vector<12x80xf32>
    tpu.vector_store %arg10[%c0_42, %c0_43], %274 {strides = array<i32>} : memref<24x80xf32, #tpu.memory_space<vmem>>, vector<12x80xf32>,
    %c12_44 = arith.constant 12 : index
    %c0_45 = arith.constant 0 : index
    %280 = vector.load %arg10[%c12_44, %c0_45] : memref<24x80xf32, #tpu.memory_space<vmem>>, vector<12x80xf32>
    tpu.vector_store %arg10[%c12_44, %c0_45], %278 {strides = array<i32>} : memref<24x80xf32, #tpu.memory_space<vmem>>, vector<12x80xf32>,
    %c0_i32 = arith.constant 0 : i32
    %281 = arith.cmpi eq, %arg1, %c0_i32 : i32
    %282 = arith.extui %281 : i1 to i32
    %c0_i32_46 = arith.constant 0 : i32
    %283 = arith.cmpi ne, %282, %c0_i32_46 : i32
    scf.if %283 {
      %cst_112 = arith.constant 0.000000e+00 : f32
      %352 = vector.broadcast %cst_112 : f32 to vector<24x8xf32>
      %c0_113 = arith.constant 0 : index
      %c0_114 = arith.constant 0 : index
      %353 = vector.load %arg10[%c0_113, %c0_114] : memref<24x80xf32, #tpu.memory_space<vmem>>, vector<24x8xf32>
      tpu.vector_store %arg10[%c0_113, %c0_114], %352 {strides = array<i32>} : memref<24x80xf32, #tpu.memory_space<vmem>>, vector<24x8xf32>,
    } else {
    }
    %c0_i32_47 = arith.constant 0 : i32
    %284 = arith.cmpi eq, %arg1, %c0_i32_47 : i32
    %285 = arith.extui %284 : i1 to i32
    %c0_i32_48 = arith.constant 0 : i32
    %286 = arith.cmpi ne, %285, %c0_i32_48 : i32
    scf.if %286 {
      %cst_112 = arith.constant 0.000000e+00 : f32
      %352 = vector.broadcast %cst_112 : f32 to vector<24x8xf32>
      %c0_113 = arith.constant 0 : index
      %c72 = arith.constant 72 : index
      %353 = vector.load %arg10[%c0_113, %c72] : memref<24x80xf32, #tpu.memory_space<vmem>>, vector<24x8xf32>
      tpu.vector_store %arg10[%c0_113, %c72], %352 {strides = array<i32>} : memref<24x80xf32, #tpu.memory_space<vmem>>, vector<24x8xf32>,
    } else {
    }
    %cst = arith.constant 0.000000e+00 : f32
    %287 = vector.broadcast %cst : f32 to vector<24x1xf32>
    %cst_49 = arith.constant 0.000000e+00 : f32
    %288 = vector.broadcast %cst_49 : f32 to vector<8x64xf32>
    %cst_50 = arith.constant 0.000000e+00 : f32
    %289 = vector.broadcast %cst_50 : f32 to vector<8x64xf32>
    %cst_51 = arith.constant 0.000000e+00 : f32
    %290 = vector.broadcast %cst_51 : f32 to vector<8x64xf32>
    %c0_52 = arith.constant 0 : index
    %c0_53 = arith.constant 0 : index
    %291 = vector.load %arg10[%c0_52, %c0_53] : memref<24x80xf32, #tpu.memory_space<vmem>>, vector<24x63xf32>
    %292 = tpu.concatenate %287, %291 in 1 : vector<24x1xf32>, vector<24x63xf32> -> vector<24x64xf32>
    %c0_54 = arith.constant 0 : index
    %c0_55 = arith.constant 0 : index
    %c0_56 = arith.constant 0 : index
    %293 = vector.load %arg5[%c0_54, %c0_55, %c0_56] : memref<9x8x24xf32, #tpu.memory_space<vmem>>, vector<1x8x24xf32>
    %294 = vector.shape_cast %293 : vector<1x8x24xf32> to vector<8x24xf32>
    %cst_57 = arith.constant dense<0.000000e+00> : vector<8x64xf32>
    %295 = tpu.matmul %294, %292, %cst_57 {dimension_numbers = #tpu.dot_dimension_numbers<[1], [0], [0], [1], [0, 0, 1, 1], [], []>} : vector<8x24xf32>, vector<24x64xf32>, vector<8x64xf32> -> vector<8x64xf32>
    %296 = arith.addf %288, %295 : vector<8x64xf32>
    %c0_58 = arith.constant 0 : index
    %c0_59 = arith.constant 0 : index
    %297 = vector.load %arg10[%c0_58, %c0_59] : memref<24x80xf32, #tpu.memory_space<vmem>>, vector<24x64xf32>
    %c1_60 = arith.constant 1 : index
    %c0_61 = arith.constant 0 : index
    %c0_62 = arith.constant 0 : index
    %298 = vector.load %arg5[%c1_60, %c0_61, %c0_62] : memref<9x8x24xf32, #tpu.memory_space<vmem>>, vector<1x8x24xf32>
    %299 = vector.shape_cast %298 : vector<1x8x24xf32> to vector<8x24xf32>
    %cst_63 = arith.constant dense<0.000000e+00> : vector<8x64xf32>
    %300 = tpu.matmul %299, %297, %cst_63 {dimension_numbers = #tpu.dot_dimension_numbers<[1], [0], [0], [1], [0, 0, 1, 1], [], []>} : vector<8x24xf32>, vector<24x64xf32>, vector<8x64xf32> -> vector<8x64xf32>
    %301 = arith.addf %289, %300 : vector<8x64xf32>
    %c0_64 = arith.constant 0 : index
    %c1_65 = arith.constant 1 : index
    %302 = vector.load %arg10[%c0_64, %c1_65] : memref<24x80xf32, #tpu.memory_space<vmem>>, vector<24x64xf32>
    %c2_66 = arith.constant 2 : index
    %c0_67 = arith.constant 0 : index
    %c0_68 = arith.constant 0 : index
    %303 = vector.load %arg5[%c2_66, %c0_67, %c0_68] : memref<9x8x24xf32, #tpu.memory_space<vmem>>, vector<1x8x24xf32>
    %304 = vector.shape_cast %303 : vector<1x8x24xf32> to vector<8x24xf32>
    %cst_69 = arith.constant dense<0.000000e+00> : vector<8x64xf32>
    %305 = tpu.matmul %304, %302, %cst_69 {dimension_numbers = #tpu.dot_dimension_numbers<[1], [0], [0], [1], [0, 0, 1, 1], [], []>} : vector<8x24xf32>, vector<24x64xf32>, vector<8x64xf32> -> vector<8x64xf32>
    %306 = arith.addf %290, %305 : vector<8x64xf32>
    %c0_70 = arith.constant 0 : index
    %c7_71 = arith.constant 7 : index
    %307 = vector.load %arg10[%c0_70, %c7_71] : memref<24x80xf32, #tpu.memory_space<vmem>>, vector<24x64xf32>
    %c3_72 = arith.constant 3 : index
    %c0_73 = arith.constant 0 : index
    %c0_74 = arith.constant 0 : index
    %308 = vector.load %arg5[%c3_72, %c0_73, %c0_74] : memref<9x8x24xf32, #tpu.memory_space<vmem>>, vector<1x8x24xf32>
    %309 = vector.shape_cast %308 : vector<1x8x24xf32> to vector<8x24xf32>
    %cst_75 = arith.constant dense<0.000000e+00> : vector<8x64xf32>
    %310 = tpu.matmul %309, %307, %cst_75 {dimension_numbers = #tpu.dot_dimension_numbers<[1], [0], [0], [1], [0, 0, 1, 1], [], []>} : vector<8x24xf32>, vector<24x64xf32>, vector<8x64xf32> -> vector<8x64xf32>
    %311 = arith.addf %296, %310 : vector<8x64xf32>
    %c0_76 = arith.constant 0 : index
    %c8_77 = arith.constant 8 : index
    %312 = vector.load %arg10[%c0_76, %c8_77] : memref<24x80xf32, #tpu.memory_space<vmem>>, vector<24x64xf32>
    %c4_78 = arith.constant 4 : index
    %c0_79 = arith.constant 0 : index
    %c0_80 = arith.constant 0 : index
    %313 = vector.load %arg5[%c4_78, %c0_79, %c0_80] : memref<9x8x24xf32, #tpu.memory_space<vmem>>, vector<1x8x24xf32>
    %314 = vector.shape_cast %313 : vector<1x8x24xf32> to vector<8x24xf32>
    %cst_81 = arith.constant dense<0.000000e+00> : vector<8x64xf32>
    %315 = tpu.matmul %314, %312, %cst_81 {dimension_numbers = #tpu.dot_dimension_numbers<[1], [0], [0], [1], [0, 0, 1, 1], [], []>} : vector<8x24xf32>, vector<24x64xf32>, vector<8x64xf32> -> vector<8x64xf32>
    %316 = arith.addf %301, %315 : vector<8x64xf32>
    %c0_82 = arith.constant 0 : index
    %c9_83 = arith.constant 9 : index
    %317 = vector.load %arg10[%c0_82, %c9_83] : memref<24x80xf32, #tpu.memory_space<vmem>>, vector<24x64xf32>
    %c5_84 = arith.constant 5 : index
    %c0_85 = arith.constant 0 : index
    %c0_86 = arith.constant 0 : index
    %318 = vector.load %arg5[%c5_84, %c0_85, %c0_86] : memref<9x8x24xf32, #tpu.memory_space<vmem>>, vector<1x8x24xf32>
    %319 = vector.shape_cast %318 : vector<1x8x24xf32> to vector<8x24xf32>
    %cst_87 = arith.constant dense<0.000000e+00> : vector<8x64xf32>
    %320 = tpu.matmul %319, %317, %cst_87 {dimension_numbers = #tpu.dot_dimension_numbers<[1], [0], [0], [1], [0, 0, 1, 1], [], []>} : vector<8x24xf32>, vector<24x64xf32>, vector<8x64xf32> -> vector<8x64xf32>
    %321 = arith.addf %306, %320 : vector<8x64xf32>
    %c0_88 = arith.constant 0 : index
    %c15_89 = arith.constant 15 : index
    %322 = vector.load %arg10[%c0_88, %c15_89] : memref<24x80xf32, #tpu.memory_space<vmem>>, vector<24x64xf32>
    %c6_90 = arith.constant 6 : index
    %c0_91 = arith.constant 0 : index
    %c0_92 = arith.constant 0 : index
    %323 = vector.load %arg5[%c6_90, %c0_91, %c0_92] : memref<9x8x24xf32, #tpu.memory_space<vmem>>, vector<1x8x24xf32>
    %324 = vector.shape_cast %323 : vector<1x8x24xf32> to vector<8x24xf32>
    %cst_93 = arith.constant dense<0.000000e+00> : vector<8x64xf32>
    %325 = tpu.matmul %324, %322, %cst_93 {dimension_numbers = #tpu.dot_dimension_numbers<[1], [0], [0], [1], [0, 0, 1, 1], [], []>} : vector<8x24xf32>, vector<24x64xf32>, vector<8x64xf32> -> vector<8x64xf32>
    %326 = arith.addf %311, %325 : vector<8x64xf32>
    %c0_94 = arith.constant 0 : index
    %c16_95 = arith.constant 16 : index
    %327 = vector.load %arg10[%c0_94, %c16_95] : memref<24x80xf32, #tpu.memory_space<vmem>>, vector<24x64xf32>
    %c7_96 = arith.constant 7 : index
    %c0_97 = arith.constant 0 : index
    %c0_98 = arith.constant 0 : index
    %328 = vector.load %arg5[%c7_96, %c0_97, %c0_98] : memref<9x8x24xf32, #tpu.memory_space<vmem>>, vector<1x8x24xf32>
    %329 = vector.shape_cast %328 : vector<1x8x24xf32> to vector<8x24xf32>
    %cst_99 = arith.constant dense<0.000000e+00> : vector<8x64xf32>
    %330 = tpu.matmul %329, %327, %cst_99 {dimension_numbers = #tpu.dot_dimension_numbers<[1], [0], [0], [1], [0, 0, 1, 1], [], []>} : vector<8x24xf32>, vector<24x64xf32>, vector<8x64xf32> -> vector<8x64xf32>
    %331 = arith.addf %316, %330 : vector<8x64xf32>
    %c0_100 = arith.constant 0 : index
    %c17_101 = arith.constant 17 : index
    %332 = vector.load %arg10[%c0_100, %c17_101] : memref<24x80xf32, #tpu.memory_space<vmem>>, vector<24x63xf32>
    %333 = tpu.concatenate %332, %287 in 1 : vector<24x63xf32>, vector<24x1xf32> -> vector<24x64xf32>
    %c8_102 = arith.constant 8 : index
    %c0_103 = arith.constant 0 : index
    %c0_104 = arith.constant 0 : index
    %334 = vector.load %arg5[%c8_102, %c0_103, %c0_104] : memref<9x8x24xf32, #tpu.memory_space<vmem>>, vector<1x8x24xf32>
    %335 = vector.shape_cast %334 : vector<1x8x24xf32> to vector<8x24xf32>
    %cst_105 = arith.constant dense<0.000000e+00> : vector<8x64xf32>
    %336 = tpu.matmul %335, %333, %cst_105 {dimension_numbers = #tpu.dot_dimension_numbers<[1], [0], [0], [1], [0, 0, 1, 1], [], []>} : vector<8x24xf32>, vector<24x64xf32>, vector<8x64xf32> -> vector<8x64xf32>
    %337 = arith.addf %321, %336 : vector<8x64xf32>
    %338 = vector.extract_strided_slice %0 {offsets = [0, 0], sizes = [1, 64], strides = [1, 1]} : vector<1x80xf32> to vector<1x64xf32>
    %339 = vector.broadcast %338 : vector<1x64xf32> to vector<8x64xf32>
    %340 = arith.mulf %339, %326 : vector<8x64xf32>
    %341 = arith.addf %331, %340 : vector<8x64xf32>
    %342 = vector.extract_strided_slice %1 {offsets = [0, 0], sizes = [1, 64], strides = [1, 1]} : vector<1x80xf32> to vector<1x64xf32>
    %343 = vector.broadcast %342 : vector<1x64xf32> to vector<8x64xf32>
    %344 = arith.mulf %343, %337 : vector<8x64xf32>
    %345 = arith.addf %341, %344 : vector<8x64xf32>
    %c0_106 = arith.constant 0 : index
    %c0_107 = arith.constant 0 : index
    %346 = vector.load %arg6[%c0_106, %c0_107] : memref<8x1xf32, #tpu.memory_space<vmem>>, vector<8x1xf32>
    %347 = vector.broadcast %346 : vector<8x1xf32> to vector<8x64xf32>
    %348 = arith.addf %345, %347 : vector<8x64xf32>
    %c0_108 = arith.constant 0 : index
    %c0_109 = arith.constant 0 : index
    %c0_110 = arith.constant 0 : index
    %c0_111 = arith.constant 0 : index
    %349 = vector.load %arg9[%c0_108, %c0_109, %c0_110, %c0_111] : memref<1x1x8x64xf32, #tpu.memory_space<vmem>>, vector<1x1x8x64xf32>
    %350 = vector.shape_cast %349 : vector<1x1x8x64xf32> to vector<8x64xf32>
    %351 = vector.shape_cast %348 : vector<8x64xf32> to vector<1x1x8x64xf32>
    tpu.vector_store %arg9[%c0_108, %c0_109, %c0_110, %c0_111], %351 {strides = array<i32>} : memref<1x1x8x64xf32, #tpu.memory_space<vmem>>, vector<1x1x8x64xf32>,
    return
  }
  func.func @transform_0(%arg0: i32, %arg1: i32) -> (i32, i32, i32, i32) {
    %c0_i32 = arith.constant 0 : i32
    %c0_i32_0 = arith.constant 0 : i32
    %c0_i32_1 = arith.constant 0 : i32
    return %arg0, %arg1, %c0_i32, %c0_i32_0 : i32, i32, i32, i32
  }
  func.func @transform_1(%arg0: i32, %arg1: i32) -> i32 {
    %c0_i32 = arith.constant 0 : i32
    %c0_i32_0 = arith.constant 0 : i32
    return %c0_i32 : i32
  }
  func.func @transform_2(%arg0: i32, %arg1: i32) -> i32 {
    %c0_i32 = arith.constant 0 : i32
    %c0_i32_0 = arith.constant 0 : i32
    return %c0_i32 : i32
  }
  func.func @transform_3(%arg0: i32, %arg1: i32) -> (i32, i32, i32) {
    %c0_i32 = arith.constant 0 : i32
    %c0_i32_0 = arith.constant 0 : i32
    %c0_i32_1 = arith.constant 0 : i32
    %c0_i32_2 = arith.constant 0 : i32
    return %c0_i32, %c0_i32_0, %c0_i32_1 : i32, i32, i32
  }
  func.func @transform_4(%arg0: i32, %arg1: i32) -> (i32, i32) {
    %c0_i32 = arith.constant 0 : i32
    %c0_i32_0 = arith.constant 0 : i32
    %c0_i32_1 = arith.constant 0 : i32
    return %c0_i32, %c0_i32_0 : i32, i32
  }
  func.func @transform_5(%arg0: i32, %arg1: i32) -> (i32, i32) {
    %c0_i32 = arith.constant 0 : i32
    %c0_i32_0 = arith.constant 0 : i32
    %c0_i32_1 = arith.constant 0 : i32
    return %c0_i32, %c0_i32_0 : i32, i32
  }
  func.func @transform_6(%arg0: i32, %arg1: i32) -> (i32, i32) {
    %c0_i32 = arith.constant 0 : i32
    %c0_i32_0 = arith.constant 0 : i32
    %c0_i32_1 = arith.constant 0 : i32
    return %c0_i32, %c0_i32_0 : i32, i32
  }
  func.func @transform_7(%arg0: i32, %arg1: i32) -> (i32, i32, i32, i32) {
    %c0_i32 = arith.constant 0 : i32
    %c0_i32_0 = arith.constant 0 : i32
    %c0_i32_1 = arith.constant 0 : i32
    return %arg0, %arg1, %c0_i32, %c0_i32_0 : i32, i32, i32, i32
  }
}

</mosaic_0001>

<bundles_post_ra>
// kernel: pack_forward.1
= control target key start
LH: loop header
LB: loop body
LE: loop exit
PB: predicated region body
PF: predicated region fallthrough
CT: control target
= control target key end

     0   :  { %12 = vsyncpa [#allocation4], 0  ;;  %s3321_s0 = inlined_call_operand.vmem [shape: f32[2,1,14,98], index: 0, kind: input, shape index: {}]   ;;  %s3322_s1 = inlined_call_operand.vmem [shape: f32[54], index: 1, kind: input, shape index: {}]   ;;  %s3323_s2 = inlined_call_operand.vmem [shape: f32[2], index: 2, kind: input, shape index: {}]   ;;  %s3324_s3 = inlined_call_operand.vmem [shape: f32[9,8,24], index: 3, kind: input, shape index: {}]   ;;  %s3325_s4 = inlined_call_operand.vmem [shape: f32[8,1], index: 4, kind: input, shape index: {}]   ;;  %s3326_s5 = inlined_call_operand.vmem [shape: f32[1,80], index: 5, kind: input, shape index: {}]   ;;  %s3327_s6 = inlined_call_operand.vmem [shape: f32[1,80], index: 6, kind: input, shape index: {}]   ;;  %s3328_s7 = inlined_call_operand.vmem [shape: f32[2,1,8,64], index: 7, kind: output, shape index: {}]  }
   0x1   :  { %13 = vsyncpa [#allocation6], 0  ;;  %s2600_s24 = smov 0   ;;  %s2602_s25 = smov 0  }
   0x2   :  { %s2604_s26 = smov 0  }
   0x3 LB: > { %s2117_s27 = sadd.s32 4294967295, %s2536_s26   ;;  %s31_s28 = sadd.s32 1, %s2532_s25  ;;  %s2536_s26 = sphi %s2604_s26, %s19_s26   ;;  %s2532_s25 = sphi %s2602_s25, %s3340_s25   ;;  %s2528_s24 = sphi %s2600_s24, %s3339_s24  }
   0x4   : > { %p33_p0 = scmp.ge.s32.totalorder %s31_s28, 2  ;;  %p2119_p1 = scmp.ge.s32.totalorder %s2536_s26, 1 }
   0x5   : > { %p218_p2 = scmp.lt.s32.totalorder %s2536_s26, 3  ;;  %p2625_p4 = scmp.eq.s32.totalorder %s2117_s27, 0 }
   0x6   : > { %s3342_s28 = smov (%p33_p0, %s31_s28), 0  ;;  %s231_s10 = sshll.u32 %s3322_s1, 4  ;;  %s232_s10 = int_to_ptr.vmem [resolvable:$true] %s231_s10 }
   0x7   : > { %p2621_p3 = pnand %p2119_p1, %p218_p2  ;;  %s242_s13 = sshll.u32 %s3323_s2, 4  ;;  %s243_s13 = int_to_ptr.vmem [resolvable:$true] %s242_s13 }
   0x8   : > { %s3333_s30 = scalar_select %p2625_p4, 1, 0 }
   0x9   : > { %s3332_s29 = scalar_select %p2621_p3, 1, 0 }
   0xa   : > { %p2375_p5 = pneg %p2621_p3  ;;  %s2476_s15 = scalar_lea.vmem %s232_s10, 16 }
   0xb   : > { %p2477_p7 = scmp.ne.s32.totalorder %s232_s10, %s2476_s15  ;;  %p2484_p11 = scmp.lt.s32.totalorder %s232_s10, %s232_s10 }
   0xc   : > { %p2639_p6 = pnand %p2625_p4, %p2375_p5  ;;  %p2485_p12 = scmp.lt.s32.totalorder %s2476_s15, %s2476_s15 }
   0xe   : > { %p2478_p8 = pneg %p2639_p6  ;;  %p2486_p13 = por %p2485_p12, %p2484_p11 }
  0x10   : > { %p2479_p9 = pnand %p2478_p8, %p2477_p7 }
  0x12   : > { %p2480_p10 = pneg %p2479_p9 }
  0x14   : > { %p2487_p0 = pnand %p2486_p13, %p2480_p10 }
  0x16   : > { %2490 = shalt.err (!%p2487_p0)
}
  0x17   : > { %s2538_s16 = smov [#allocation3]   ;;  %s2491_s17 = scalar_lea.vmem %s243_s13, 16 }
  0x18   : > { %2378 = dma.vmem_to_smem (!%p2639_p6), %s232_s10, 16, %s2538_s16, [#allocation4]  }
  0x19   : > { %p2492_p1 = scmp.ne.s32.totalorder %s243_s13, %s2491_s17  ;;  %p2499_p4 = scmp.lt.s32.totalorder %s243_s13, %s243_s13 }
  0x1a   : > { %p2500_p3 = scmp.lt.s32.totalorder %s2491_s17, %s2491_s17 }
  0x1b   : > { %p2494_p2 = pnand %p2492_p1, %p2478_p8 }
  0x1c   : > { %p2501_p7 = por %p2500_p3, %p2499_p4 }
  0x1d   : > { %p2495_p5 = pneg %p2494_p2 }
  0x1f   : > { %p2502_p9 = pnand %p2501_p7, %p2495_p5 }
  0x21   : > { %2505 = shalt.err (!%p2502_p9)
}
  0x22   : > { %s2539_s18 = smov [#allocation5]   ;;  %p3335_p10 = scmp.ne.s32.totalorder %s3332_s29, 0 }
  0x23   : > { %2381 = dma.vmem_to_smem (!%p2639_p6), %s243_s13, 16, %s2539_s18, [#allocation6]  }
  0x24   : > { %279 = sbr.rel (%p3335_p10) target bundleno = 807 (0x327), region = 48  ;;  %p3336_p11 = scmp.ne.s32.totalorder (!%p3335_p10), %s3333_s30, 0 }
  0x2b   : > { %2519 = dma.done.wait (%p3336_p11), [#allocation4], 16  }
  0x2c   : > { %2521 = vsyncadd (%p3336_p11), [#allocation4], 4294967280 }
  0x2d   : > { %2523 = dma.done.wait (%p3336_p11), [#allocation6], 16  }
  0x2e   : > { %2525 = vsyncadd (%p3336_p11), [#allocation6], 4294967280 }
  0x2f   : > { %289 = sfence }
  0x30   : > { %v2142_v0 = vld [vmem:[%s3327_s6] ss:$0 sm:$0xff]  ;;  %s2540_s21 = smov 2   ;;  %p322_p3 = scmp.lt.s32.totalorder %s2528_s24, 1  ;;  %vm372_vm0 = vcmask 1046528   ;;  %vm399_vm1 = vcmask 1045504  }
  0x31   : > { %521 = vrot.lane.b32.xlu0 %v2142_v0, %s2540_s21  ;;  %v2666_v1 = vld [vmem:[%s3326_s5] ss:$0 sm:$0xff]  ;;  %s2541_s27 = smov 10   ;;  %s2136_s29 = sld [smem:[#allocation3 + $0x1]]  ;;  %vm1220_vm2 = vcmask 650240   ;;  %vm1218_vm3 = vcmask 654336  }
  0x32   : > { %819 = vrot.lane.b32.xlu1 %v2142_v0, %s2541_s27  ;;  %s3344_s24 = smov (!%p322_p3, %s2528_s24), 1  ;;  %s2542_s30 = smov 8   ;;  %vm1228_vm4 = vcmask 64512   ;;  %vm1232_vm5 = vcmask 654912   ;;  %vm2555_vm6 = vmmov 0   ;;  %vm1251_vm7 = vcmask 7168  }
  0x33   : > { %s2213_s8 = sshll.u32 %s3344_s24, 4  ;;  %s2138_s9 = sld [smem:[#allocation3 + $0xa]]  ;;  %vm3220_vm8 = vmneg %vm1251_vm7  ;;  %vm1271_vm10 = vcmask 195584   ;;  %vm1920_vm11 = vcmask 515072   ;;  %vm2012_vm13 = vcmask 523264  }
  0x34   : > { %s330_s12 = scalar_lea.vmem %s3321_s0, %s2213_s8  ;;  %s2543_s13 = smov 16   ;;  %vm2336_vm9 = vmpackc.low %vm3220_vm8, %vm3220_vm8 }
  0x35   : > { %622 = vrot.lane.b32.xlu0 %v2666_v1, %s2542_s30  ;;  %s2677_s14 = sld [smem:[#allocation3 + $0x1c]]  ;;  %v2679_v2 = vld [vmem:[%s330_s12] sm:$0xff]  ;;  %s2139_s15 = sld [smem:[#allocation3 + $0x25]]  ;;  %v2681_v3 = vld [vmem:[%s330_s12 + $0x8] sm:$0x3f]  ;;  %vm2358_vm12 = vmpackc.low %vm1920_vm11, %vm1920_vm11 }
  0x36   : > { %920 = vrot.lane.b32.xlu1 %v2666_v1, %s2543_s13  ;;  %s2140_s16 = sld [smem:[#allocation3 + $0x13]]  ;;  %s2683_s17 = sld [smem:[#allocation3 + $0x2e]] }
  0x37   : > { %s2544_s18 = smov 18   ;;  %v421_v4 = vstv %s2136_s29  ;;  %s2545_s19 = smov 127  }
  0x38   : > { %v423_v5 = vmul.f32 %v421_v4, %v2681_v3  ;;  %v422_v6 = vmul.f32 %v421_v4, %v2679_v2  ;;  %s2704_s20 = sld [smem:[#allocation3 + $0x4]]  ;;  %s2157_s21 = sld [smem:[#allocation3 + $0xd]] }
  0x39   : > { %1117 = vrot.lane.b32.xlu0 %v2142_v0, %s2544_s18  ;;  %v449_v7 = vstv %s2138_s9  ;;  %s2709_s22 = sld [smem:[#allocation3 + $0x1f]]  ;;  %s2158_s23 = sld [smem:[#allocation3 + $0x28]] }
  0x3a   : > { %v450_v8 = vmul.f32 %v449_v7, %v2679_v2  ;;  %v451_v9 = vmul.f32 %v449_v7, %v2681_v3  ;;  %426 = vrot.lane.b32.xlu1 %v422_v6, %s2545_s19  ;;  %s2159_s27 = sld [smem:[#allocation3 + $0x16]]  ;;  %s2160_s29 = sld [smem:[#allocation3 + $0x31]] }
  0x3b   : > { %v435_v10 = vstv %s2677_s14  ;;  %v466_v12 = vstv %s2139_s15  ;;  %s2546_s30 = smov 119   ;;  %s2143_s8 = sld [smem:[#allocation3 + $0x2]] }
  0x3c   : > { %v436_v11 = vmul.f32 %v435_v10, %v2679_v2  ;;  %v454_v13 = vrot.slane %v450_v8, 1  ;;  %v455_v14 = vrot.slane %v451_v9, 1  ;;  %v467_v15 = vmul.f32 %v466_v12, %v2679_v2  ;;  %s2144_s9 = sld [smem:[#allocation3 + $0x1d]]  ;;  %s2149_s10 = sld [smem:[#allocation3 + $0x3]] }
  0x3d   : > { %428 = vrot.lane.b32.xlu0 %v423_v5, %s2545_s19  ;;  %v468_v16 = vmul.f32 %v466_v12, %v2681_v3  ;;  %v483_v17 = vstv %s2140_s16  ;;  %v500_v18 = vstv %s2683_s17  ;;  %v437_v32 = vmul.f32 %v435_v10, %v2681_v3  ;;  %s2150_s11 = sld [smem:[#allocation3 + $0x1e]]  ;;  %s2547_s12 = smov 126  }
  0x3e   : > { %v456_v19 = vsel %vm372_vm0, %v454_v13, %v455_v14  ;;  %v471_v20 = vrot.slane %v467_v15, 1  ;;  %v484_v22 = vmul.f32 %v483_v17, %v2679_v2  ;;  %440 = vrot.lane.b32.xlu1 %v436_v11, %s2545_s19  ;;  %v485_v23 = vmul.f32 %v483_v17, %v2681_v3  ;;  %s2161_s13 = sld [smem:[#allocation3 + $0x5]]  ;;  %s2145_s14 = sld [smem:[#allocation3 + $0xb]] }
  0x3f   : > { %v472_v21 = vrot.slane %v468_v16, 1  ;;  %v501_v26 = vmul.f32 %v500_v18, %v2679_v2  ;;  %v502_v27 = vmul.f32 %v500_v18, %v2681_v3  ;;  %v724_v34 = vstv %s2704_s20  ;;  %s2771_s15 = sld [smem:[#allocation3 + $0x20]]  ;;  %s2773_s16 = sld [smem:[#allocation3 + $0x14]] }
  0x40   : > { %v488_v25 = vrot.slane %v484_v22, 2  ;;  %v489_v28 = vrot.slane %v485_v23, 2  ;;  %v725_v35 = vmul.f32 %v724_v34, %v2679_v2  ;;  %v752_v36 = vstv %s2157_s21  ;;  %s2548_s17 = smov 120   ;;  %s2146_s18 = sld [smem:[#allocation3 + $0x26]] }
  0x41   : > { %457 = vrot.lane.b32.xlu0 %v456_v19, %s2545_s19  ;;  %v473_v24 = vsel %vm372_vm0, %v471_v20, %v472_v21  ;;  %v505_v30 = vrot.slane %v501_v26, 2  ;;  %v506_v31 = vrot.slane %v502_v27, 2  ;;  %v753_v37 = vmul.f32 %v752_v36, %v2679_v2  ;;  %s2790_s20 = sld [smem:[#allocation3 + $0xc]]  ;;  %s2549_s21 = smov 118  }
  0x42   : > { %459 = vrot.lane.b32.xlu1 %v455_v14, %s2545_s19  ;;  %v490_v29 = vsel %vm399_vm1, %v488_v25, %v489_v28  ;;  %v738_v38 = vstv %s2709_s22  ;;  %v769_v39 = vstv %s2158_s23  ;;  %v754_v40 = vmul.f32 %v752_v36, %v2681_v3  ;;  %s2148_s22 = sld [smem:[#allocation3 + $0x2f]]  ;;  %s2806_s23 = sld [smem:[#allocation3 + $0x15]] }
  0x43   : > { %v507_v33 = vsel %vm399_vm1, %v505_v30, %v506_v31  ;;  %v739_v41 = vmul.f32 %v738_v38, %v2679_v2  ;;  %v757_v42 = vrot.slane %v753_v37, 1  ;;  %v770_v43 = vmul.f32 %v769_v39, %v2679_v2 }
  0x44   : > { %v771_v44 = vmul.f32 %v769_v39, %v2681_v3  ;;  %v758_v45 = vrot.slane %v754_v40, 1  ;;  %v726_v46 = vmul.f32 %v724_v34, %v2681_v3  ;;  %v786_v47 = vstv %s2159_s27  ;;  %s2152_s27 = sld [smem:[#allocation3 + $0x27]] }
  0x45   : > { %474 = vrot.lane.b32.xlu0 %v473_v24, %s2545_s19  ;;  %v787_v48 = vmul.f32 %v786_v47, %v2679_v2  ;;  %v774_v50 = vrot.slane %v770_v43, 1  ;;  %v803_v52 = vstv %s2160_s29  ;;  %v788_v53 = vmul.f32 %v786_v47, %v2681_v3  ;;  %s2819_s29 = sld [smem:[#allocation3 + $0x30]] }
  0x46   : > { %491 = vrot.lane.b32.xlu1 %v490_v29, %s2545_s19  ;;  %v759_v49 = vsel %vm372_vm0, %v757_v42, %v758_v45  ;;  %v775_v51 = vrot.slane %v771_v44, 1  ;;  %v804_v56 = vmul.f32 %v803_v52, %v2679_v2  ;;  %v805_v57 = vmul.f32 %v803_v52, %v2681_v3 }
  0x47   : > { %v791_v55 = vrot.slane %v787_v48, 2  ;;  %v792_v58 = vrot.slane %v788_v53, 2  ;;  %v740_v62 = vmul.f32 %v738_v38, %v2681_v3  ;;  %v527_v4 = vstv %s2143_s8  ;;  %s2163_s8 = sld [smem:[#allocation3 + $0xe]] }
  0x48   : > { %v776_v54 = vsel %vm372_vm0, %v774_v50, %v775_v51  ;;  %v809_v60 = vrot.slane %v805_v57, 2  ;;  %v808_v61 = vrot.slane %v804_v56, 2  ;;  %v541_v10 = vstv %s2144_s9  ;;  %s2838_s9 = sld [smem:[#allocation3 + $0x17]] }
  0x49   : > { %493 = vrot.lane.b32.xlu0 %v489_v28, %s2545_s19  ;;  %v793_v59 = vsel %vm399_vm1, %v791_v55, %v792_v58  ;;  %v628_v13 = vstv %s2149_s10  ;;  %v642_v19 = vstv %s2150_s11  ;;  %v825_v22 = vstv %s2161_s13  ;;  %s2164_s10 = sld [smem:[#allocation3 + $0x29]]  ;;  %s2166_s11 = sld [smem:[#allocation3 + $0x32]] }
  0x4a   : > { %508 = vrot.lane.b32.xlu1 %v507_v33, %s2545_s19  ;;  %v810_v63 = vsel %vm399_vm1, %v808_v61, %v809_v60  ;;  %v555_v25 = vstv %s2145_s14  ;;  %v839_v30 = vstv %s2771_s15  ;;  %v656_v40 = vstv %s2790_s20  ;;  %s2867_s13 = sld [smem:[#allocation3 + $0xf]]  ;;  %s2896_s14 = sld [smem:[#allocation3 + $0x21]] }
  0x4b   : > { %v690_v52 = vstv %s2806_s23  ;;  %s2898_s15 = sld [smem:[#allocation3 + $0x18]]  ;;  %s2172_s20 = sld [smem:[#allocation3 + $0x33]] }
  0x4c   : > { %s2925_s23 = sld [smem:[#allocation3 + $0x10]] }
  0x4d   : > { %442 = vrot.lane.b32.xlu0 %v437_v32, %s2545_s19  ;;  %v572_v32 = vstv %s2146_s18  ;;  %s2170_s18 = sld [smem:[#allocation3 + $0x2a]] }
  0x4e   : > { %729 = vrot.lane.b32.xlu1 %v725_v35, %s2546_s30 }
  0x51   : > { %476 = vrot.lane.b32.xlu0 %v472_v21, %s2545_s19 }
  0x52   : > { %743 = vrot.lane.b32.xlu1 %v739_v41, %s2546_s30 }
  0x55   : > { %510 = vrot.lane.b32.xlu0 %v506_v31, %s2545_s19  ;;  %v589_v31 = vstv %s2773_s16  ;;  %s2550_s16 = smov 112  }
  0x56   : > { %760 = vrot.lane.b32.xlu1 %v759_v49, %s2546_s30 }
  0x59   : > { %731 = vrot.lane.b32.xlu0 %v726_v46, %s2546_s30 }
  0x5a   : > { %777 = vrot.lane.b32.xlu1 %v776_v54, %s2546_s30 }
  0x5d   : > { %762 = vrot.lane.b32.xlu0 %v758_v45, %s2546_s30  ;;  %v606_v45 = vstv %s2148_s22  ;;  %s2917_s22 = sld [smem:[#allocation3 + $0x7]] }
  0x5e   : > { %794 = vrot.lane.b32.xlu1 %v793_v59, %s2546_s30 }
  0x61   : > { %796 = vrot.lane.b32.xlu0 %v792_v58, %s2546_s30  ;;  %v673_v58 = vstv %s2152_s27  ;;  %s2948_s27 = sld [smem:[#allocation3 + $0x19]] }
  0x62   : > { %811 = vrot.lane.b32.xlu1 %v810_v63, %s2546_s30 }
  0x65   : > { %745 = vrot.lane.b32.xlu0 %v740_v62, %s2546_s30 }
  0x69   : > { %779 = vrot.lane.b32.xlu0 %v775_v51, %s2546_s30 }
  0x6d   : > { %813 = vrot.lane.b32.xlu0 %v809_v60, %s2546_s30 }
  0xa3   : > { %v522_v0 = vpop.permute.xlu0 %521 }
  0xa4   : > { %v2750_v5 = vmul.f32 %v522_v0, %v2679_v2  ;;  %v2753_v6 = vmul.f32 %v522_v0, %v2681_v3  ;;  %v820_v18 = vpop.permute.xlu1 %819 }
  0xa5   : > { %v2778_v20 = vmul.f32 %v820_v18, %v2679_v2  ;;  %v2781_v21 = vmul.f32 %v820_v18, %v2681_v3 }
  0xa6   : > { %v529_v7 = vmul.f32 %v527_v4, %v2753_v6  ;;  %v528_v8 = vmul.f32 %v527_v4, %v2750_v5  ;;  %v543_v14 = vmul.f32 %v541_v10, %v2753_v6  ;;  %v542_v15 = vmul.f32 %v541_v10, %v2750_v5 }
  0xa7   : > { %v623_v9 = vpop.permute.xlu0 %622  ;;  %v827_v26 = vmul.f32 %v825_v22, %v2781_v21  ;;  %v826_v27 = vmul.f32 %v825_v22, %v2778_v20  ;;  %v557_v28 = vmul.f32 %v555_v25, %v2753_v6  ;;  %v556_v29 = vmul.f32 %v555_v25, %v2750_v5 }
  0xa8   : > { %534 = vrot.lane.b32.xlu0 %v529_v7, %s2547_s12  ;;  %532 = vrot.lane.b32.xlu1 %v528_v8, %s2547_s12  ;;  %v2760_v11 = vmul.f32 %v623_v9, %v2679_v2  ;;  %v2763_v12 = vmul.f32 %v623_v9, %v2681_v3  ;;  %v840_v34 = vmul.f32 %v839_v30, %v2778_v20  ;;  %v921_v18 = vpop.permute.xlu1 %920  ;;  %v887_v25 = vstv %s2838_s9  ;;  %s2961_s9 = sld [smem:[#allocation3 + $0x9]] }
  0xa9   : > { %v561_v33 = vrot.slane %v557_v28, 1  ;;  %v591_v35 = vmul.f32 %v589_v31, %v2753_v6  ;;  %v560_v36 = vrot.slane %v556_v29, 1  ;;  %v573_v37 = vmul.f32 %v572_v32, %v2750_v5 }
  0xaa   : > { %v630_v16 = vmul.f32 %v628_v13, %v2763_v12  ;;  %v629_v17 = vmul.f32 %v628_v13, %v2760_v11  ;;  %v644_v23 = vmul.f32 %v642_v19, %v2763_v12  ;;  %v643_v24 = vmul.f32 %v642_v19, %v2760_v11 }
  0xab   : > { %v574_v38 = vmul.f32 %v572_v32, %v2753_v6  ;;  %v595_v39 = vrot.slane %v591_v35, 2  ;;  %v590_v41 = vmul.f32 %v589_v31, %v2750_v5  ;;  %v562_v42 = vsel %vm372_vm0, %v560_v36, %v561_v33  ;;  %v2821_v53 = vpop.permute.xlu0 %1117 }
  0xac   : > { %548 = vrot.lane.b32.xlu0 %v543_v14, %s2547_s12  ;;  %546 = vrot.lane.b32.xlu1 %v542_v15, %s2547_s12  ;;  %v577_v44 = vrot.slane %v573_v37, 1  ;;  %v658_v46 = vmul.f32 %v656_v40, %v2763_v12  ;;  %v607_v49 = vmul.f32 %v606_v45, %v2750_v5  ;;  %v608_v50 = vmul.f32 %v606_v45, %v2753_v6  ;;  %v2860_v29 = vpop.permute.xlu1 %426 }
  0xad   : > { %v578_v43 = vrot.slane %v574_v38, 1  ;;  %v594_v48 = vrot.slane %v590_v41, 2  ;;  %v657_v54 = vmul.f32 %v656_v40, %v2760_v11  ;;  %v692_v59 = vmul.f32 %v690_v52, %v2763_v12 }
  0xae   : > { %v662_v51 = vrot.slane %v658_v46, 1  ;;  %v612_v56 = vrot.slane %v608_v50, 2  ;;  %v611_v57 = vrot.slane %v607_v49, 2  ;;  %v674_v62 = vmul.f32 %v673_v58, %v2760_v11 }
  0xaf   : > { %v579_v47 = vsel %vm372_vm0, %v577_v44, %v578_v43  ;;  %v596_v55 = vsel %vm399_vm1, %v594_v48, %v595_v39  ;;  %v661_v61 = vrot.slane %v657_v54, 1  ;;  %v675_v63 = vmul.f32 %v673_v58, %v2763_v12  ;;  %v2833_v0 = vpop.permute.xlu0 %428 }
  0xb0   : > { %635 = vrot.lane.b32.xlu0 %v630_v16, %s2548_s17  ;;  %633 = vrot.lane.b32.xlu1 %v629_v17, %s2548_s17  ;;  %v613_v60 = vsel %vm399_vm1, %v611_v57, %v612_v56  ;;  %v696_v4 = vrot.slane %v692_v59, 2  ;;  %v707_v5 = vstv %s2819_s29  ;;  %v691_v6 = vmul.f32 %v690_v52, %v2760_v11  ;;  %s2950_s29 = sld [smem:[#allocation3 + $0x2b]] }
  0xb1   : > { %v663_v7 = vsel %vm372_vm0, %v661_v61, %v662_v51  ;;  %v679_v8 = vrot.slane %v675_v63, 1  ;;  %v678_v9 = vrot.slane %v674_v62, 1  ;;  %v709_v10 = vmul.f32 %v707_v5, %v2763_v12 }
  0xb2   : > { %v708_v15 = vmul.f32 %v707_v5, %v2760_v11  ;;  %v695_v16 = vrot.slane %v691_v6, 2  ;;  %v853_v17 = vstv %s2163_s8  ;;  %v870_v11 = vstv %s2164_s10  ;;  %s2551_s8 = smov 111   ;;  %s2969_s10 = sld [smem:[#allocation3]] }
  0xb3   : > { %v2843_v13 = vpop.permute.xlu0 %457  ;;  %v680_v14 = vsel %vm372_vm0, %v678_v9, %v679_v8  ;;  %v713_v19 = vrot.slane %v709_v10, 2  ;;  %v855_v22 = vmul.f32 %v853_v17, %v2781_v21  ;;  %v854_v12 = vmul.f32 %v853_v17, %v2778_v20 }
  0xb4   : > { %649 = vrot.lane.b32.xlu0 %v644_v23, %s2548_s17  ;;  %647 = vrot.lane.b32.xlu1 %v643_v24, %s2548_s17  ;;  %v697_v23 = vsel %vm399_vm1, %v695_v16, %v696_v4  ;;  %v712_v24 = vrot.slane %v708_v15, 2  ;;  %v889_v28 = vmul.f32 %v887_v25, %v2781_v21  ;;  %v888_v37 = vmul.f32 %v887_v25, %v2778_v20 }
  0xb5   : > { %v858_v32 = vrot.slane %v854_v12, 1  ;;  %v2876_v41 = vmul.f32 %v921_v18, %v2681_v3  ;;  %v841_v45 = vmul.f32 %v839_v30, %v2781_v21  ;;  %v954_v52 = vstv %s2867_s13  ;;  %s2988_s13 = sld [smem:[#allocation5]] }
  0xb6   : > { %v714_v31 = vsel %vm399_vm1, %v712_v24, %v713_v19  ;;  %v893_v35 = vrot.slane %v889_v28, 2  ;;  %v940_v63 = vstv %s2896_s14  ;;  %v971_v5 = vstv %s2170_s18  ;;  %s2990_s14 = sld [smem:[#allocation3 + $0x24]]  ;;  %s3003_s18 = sld [smem:[#allocation3 + $0x2d]] }
  0xb7   : > { %v973_v15 = vmul.f32 %v971_v5, %v2876_v41  ;;  %v1005_v24 = vstv %s2172_s20  ;;  %v1022_v25 = vstv %s2917_s22  ;;  %s3011_s20 = sld [smem:[#allocation3 + $0x1b]]  ;;  %s3019_s22 = sld [smem:[#allocation3 + $0x11]] }
  0xb8   : > { %832 = vrot.lane.b32.xlu0 %v827_v26, %s2549_s21  ;;  %830 = vrot.lane.b32.xlu1 %v826_v27, %s2549_s21  ;;  %v2855_v26 = vpop.permute.xlu0 %474  ;;  %v859_v27 = vrot.slane %v855_v22, 1 }
  0xb9   : > { %v977_v12 = vrot.slane %v973_v15, 1 }
  0xba   : > { %v860_v38 = vsel %vm372_vm0, %v858_v32, %v859_v27  ;;  %v1007_v32 = vmul.f32 %v1005_v24, %v2876_v41 }
  0xbc   : > { %565 = vrot.lane.b32.xlu0 %v561_v33, %s2547_s12  ;;  %844 = vrot.lane.b32.xlu1 %v840_v34, %s2549_s21  ;;  %v871_v33 = vmul.f32 %v870_v11, %v2778_v20  ;;  %v872_v34 = vmul.f32 %v870_v11, %v2781_v21  ;;  %v2869_v36 = vpop.permute.xlu0 %493  ;;  %v942_v11 = vmul.f32 %v940_v63, %v2876_v41 }
  0xbe   : > { %v876_v40 = vrot.slane %v872_v34, 1 }
  0xc0   : > { %599 = vrot.lane.b32.xlu0 %v595_v39, %s2547_s12  ;;  %563 = vrot.lane.b32.xlu1 %v562_v42, %s2547_s12  ;;  %v875_v39 = vrot.slane %v871_v33, 1  ;;  %v2878_v42 = vpop.permute.xlu1 %440  ;;  %v1024_v33 = vmul.f32 %v1022_v25, %v2681_v3 }
  0xc2   : > { %v877_v46 = vsel %vm372_vm0, %v875_v39, %v876_v40 }
  0xc4   : > { %582 = vrot.lane.b32.xlu0 %v578_v43, %s2547_s12  ;;  %580 = vrot.lane.b32.xlu1 %v579_v47, %s2547_s12  ;;  %v904_v43 = vstv %s2166_s11  ;;  %v892_v47 = vrot.slane %v888_v37, 2  ;;  %v2893_v54 = vpop.permute.xlu1 %459  ;;  %v1050_v37 = vstv %s2925_s23  ;;  %s2972_s11 = sld [smem:[#allocation3 + $0x34]]  ;;  %s3024_s23 = sld [smem:[#allocation5 + $0x1]] }
  0xc5   : > { %v905_v48 = vmul.f32 %v904_v43, %v2778_v20  ;;  %v906_v49 = vmul.f32 %v904_v43, %v2781_v21  ;;  %v923_v20 = vmul.f32 %v921_v18, %v2679_v2  ;;  %v956_v21 = vmul.f32 %v954_v52, %v2876_v41 }
  0xc6   : > { %v894_v30 = vsel %vm399_vm1, %v892_v47, %v893_v35  ;;  %v1023_v47 = vmul.f32 %v1022_v25, %v2679_v2 }
  0xc7   : > { %v960_v59 = vrot.slane %v956_v21, 1  ;;  %v955_v62 = vmul.f32 %v954_v52, %v923_v20  ;;  %v1067_v52 = vstv %s2950_s29  ;;  %s2552_s29 = smov 110  }
  0xc8   : > { %666 = vrot.lane.b32.xlu0 %v662_v51, %s2548_s17  ;;  %597 = vrot.lane.b32.xlu1 %v596_v55, %s2547_s12  ;;  %v2890_v51 = vpop.permute.xlu0 %442  ;;  %v909_v55 = vrot.slane %v905_v48, 2  ;;  %v2909_v61 = vpop.permute.xlu1 %491  ;;  %v1051_v48 = vmul.f32 %v1050_v37, %v2679_v2 }
  0xc9   : > { %v959_v10 = vrot.slane %v955_v62, 1  ;;  %v3000_v62 = vmul.f32 %v2666_v1, %v2681_v3 }
  0xca   : > { %v1055_v21 = vrot.slane %v1051_v48, 1 }
  0xcb   : > { %v961_v22 = vsel %vm372_vm0, %v959_v10, %v960_v59 }
  0xcc   : > { %616 = vrot.lane.b32.xlu0 %v612_v56, %s2547_s12  ;;  %614 = vrot.lane.b32.xlu1 %v613_v60, %s2547_s12  ;;  %s2857_s12 = sld [smem:[#allocation3 + $0x6]]  ;;  %v910_v56 = vrot.slane %v906_v49, 2  ;;  %v2904_v57 = vpop.permute.xlu0 %476 }
  0xce   : > { %v911_v58 = vsel %vm399_vm1, %v909_v55, %v910_v56 }
  0xd0   : > { %700 = vrot.lane.b32.xlu0 %v696_v4, %s2548_s17  ;;  %664 = vrot.lane.b32.xlu1 %v663_v7, %s2548_s17  ;;  %v988_v4 = vstv %s2898_s15  ;;  %v2915_v6 = vpop.permute.xlu0 %510  ;;  %v941_v7 = vmul.f32 %v940_v63, %v923_v20  ;;  %s2992_s15 = sld [smem:[#allocation3 + $0x8]]  ;;  %v367_v63 = vstv %s2961_s9  ;;  %s3069_s9 = sld [smem:[#allocation3 + $0x2c]] }
  0xd1   : > { %v990_v9 = vmul.f32 %v988_v4, %v2876_v41 }
  0xd2   : > { %v926_v44 = vstv %s2857_s12  ;;  %s2974_s12 = sld [smem:[#allocation3 + $0x12]] }
  0xd3   : > { %v928_v50 = vmul.f32 %v926_v44, %v2876_v41  ;;  %v927_v60 = vmul.f32 %v926_v44, %v923_v20  ;;  %v994_v16 = vrot.slane %v990_v9, 2  ;;  %v1052_v41 = vmul.f32 %v1050_v37, %v2681_v3 }
  0xd4   : > { %683 = vrot.lane.b32.xlu0 %v679_v8, %s2548_s17  ;;  %681 = vrot.lane.b32.xlu1 %v680_v14, %s2548_s17  ;;  %v2919_v8 = vpop.permute.xlu1 %508  ;;  %v972_v14 = vmul.f32 %v971_v5, %v923_v20  ;;  %v2927_v17 = vpop.permute.xlu0 %731 }
  0xd8   : > { %717 = vrot.lane.b32.xlu0 %v713_v19, %s2548_s17  ;;  %698 = vrot.lane.b32.xlu1 %v697_v23, %s2548_s17  ;;  %v2929_v18 = vpop.permute.xlu1 %729  ;;  %v989_v19 = vmul.f32 %v988_v4, %v923_v20  ;;  %v976_v23 = vrot.slane %v972_v14, 1  ;;  %v2941_v34 = vpop.permute.xlu0 %762  ;;  %v355_v14 = vstv %s2969_s10  ;;  %s3089_s10 = sld [smem:[#allocation3 + $0x35]] }
  0xda   : > { %v993_v28 = vrot.slane %v989_v19, 2  ;;  %v357_v19 = vmul.f32 %v355_v14, %v3000_v62 }
  0xdc   : > { %863 = vrot.lane.b32.xlu0 %v859_v27, %s2549_s21  ;;  %715 = vrot.lane.b32.xlu1 %v714_v31, %s2548_s17  ;;  %v978_v27 = vsel %vm372_vm0, %v976_v23, %v977_v12  ;;  %v1006_v31 = vmul.f32 %v1005_v24, %v923_v20  ;;  %v2956_v43 = vpop.permute.xlu0 %796  ;;  %v369_v23 = vmul.f32 %v367_v63, %v3000_v62 }
  0xde   : > { %v1010_v39 = vrot.slane %v1006_v31, 2  ;;  %v3038_v31 = vmul.f32 %v2821_v53, %v2681_v3 }
  0xe0   : > { %897 = vrot.lane.b32.xlu0 %v893_v35, %s2549_s21  ;;  %861 = vrot.lane.b32.xlu1 %v860_v38, %s2549_s21  ;;  %v2943_v35 = vpop.permute.xlu1 %743  ;;  %v995_v38 = vsel %vm399_vm1, %v993_v28, %v994_v16  ;;  %v2979_v55 = vpop.permute.xlu0 %745 }
  0xe4   : > { %846 = vrot.lane.b32.xlu0 %v841_v45, %s2549_s21  ;;  %878 = vrot.lane.b32.xlu1 %v877_v46, %s2549_s21  ;;  %v2958_v44 = vpop.permute.xlu1 %760  ;;  %v1056_v46 = vrot.slane %v1052_v41, 1 }
  0xe8   : > { %933 = vrot.lane.b32.xlu0 %v928_v50, %s2550_s16  ;;  %895 = vrot.lane.b32.xlu1 %v894_v30, %s2549_s21  ;;  %v1084_v50 = vstv %s2948_s27  ;;  %s3062_s27 = sld [smem:[#allocation3 + $0x1a]] }
  0xe9   : > { %v1086_v20 = vmul.f32 %v1084_v50, %v2681_v3  ;;  %v1085_v5 = vmul.f32 %v1084_v50, %v2679_v2 }
  0xeb   : > { %v1090_v4 = vrot.slane %v1086_v20, 2  ;;  %v361_v20 = vstv %s3011_s20 }
  0xec   : > { %880 = vrot.lane.b32.xlu0 %v876_v40, %s2549_s21  ;;  %912 = vrot.lane.b32.xlu1 %v911_v58, %s2549_s21  ;;  %v1011_v40 = vrot.slane %v1007_v32, 2  ;;  %v1068_v58 = vmul.f32 %v1067_v52, %v2679_v2  ;;  %v341_v32 = vstv %s2988_s13  ;;  %s2558_s13 = smov 113  }
  0xed   : > { %v359_v41 = vadd.f32 %v357_v19, %v341_v32 }
  0xee   : > { %v1012_v45 = vsel %vm399_vm1, %v1010_v39, %v1011_v40  ;;  %v1072_v9 = vrot.slane %v1068_v58, 1 }
  0xf0   : > { %964 = vrot.lane.b32.xlu0 %v960_v59, %s2550_s16  ;;  %931 = vrot.lane.b32.xlu1 %v927_v60, %s2550_s16  ;;  %v2986_v59 = vmul.f32 %v1067_v52, %v2681_v3  ;;  %v2996_v60 = vmul.f32 %v2666_v1, %v2679_v2  ;;  %v3013_v1 = vpop.permute.xlu0 %779 }
  0xf2   : > { %v1073_v10 = vrot.slane %v2986_v59, 1 }
  0xf4   : > { %914 = vrot.lane.b32.xlu0 %v910_v56, %s2549_s21  ;;  %945 = vrot.lane.b32.xlu1 %v941_v7, %s2550_s16  ;;  %s2946_s21 = sld [smem:[#allocation3 + $0x22]]  ;;  %v2981_v56 = vpop.permute.xlu1 %777  ;;  %v1057_v7 = vsel %vm372_vm0, %v1055_v21, %v1056_v46  ;;  %v1074_v25 = vsel %vm372_vm0, %v1072_v9, %v1073_v10  ;;  %v1151_v9 = vstv %s3019_s22 }
  0xf8   : > { %998 = vrot.lane.b32.xlu0 %v994_v16, %s2550_s16  ;;  %962 = vrot.lane.b32.xlu1 %v961_v22, %s2550_s16  ;;  %v3015_v15 = vpop.permute.xlu1 %794  ;;  %v1101_v16 = vstv %s2972_s11  ;;  %v394_v22 = vstv %s2974_s12  ;;  %s2556_s11 = smov 121   ;;  %s2557_s12 = smov 1  }
  0xf9   : > { %v3034_v28 = vmul.f32 %v1101_v16, %v2681_v3  ;;  %v396_v37 = vmul.f32 %v394_v22, %v3000_v62  ;;  %v395_v39 = vmul.f32 %v394_v22, %v2996_v60 }
  0xfa   : > { %v1036_v49 = vstv %s2946_s21  ;;  %s3060_s21 = sld [smem:[#allocation3 + $0x23]] }
  0xfb   : > { %v1037_v30 = vmul.f32 %v1036_v49, %v2679_v2  ;;  %v1038_v24 = vmul.f32 %v1036_v49, %v2681_v3  ;;  %v3049_v3 = vpop.permute.xlu0 %813 }
  0xfc   : > { %947 = vrot.lane.b32.xlu0 %v942_v11, %s2550_s16  ;;  %979 = vrot.lane.b32.xlu1 %v978_v27, %s2550_s16  ;;  %v1089_v11 = vrot.slane %v1085_v5, 2  ;;  %v1102_v27 = vmul.f32 %v1101_v16, %v2679_v2  ;;  %v3051_v48 = vpop.permute.xlu1 %811 }
  0xfe   : > { %v1091_v50 = vsel %vm399_vm1, %v1089_v11, %v1090_v4  ;;  %v1106_v52 = vrot.slane %v1102_v27, 2  ;;  %v363_v27 = vmul.f32 %v361_v20, %v3000_v62 }
 0x100   : > { %1029 = vrot.lane.b32.xlu0 %v1024_v33, %s2551_s8  ;;  %996 = vrot.lane.b32.xlu1 %v995_v38, %s2550_s16  ;;  %v381_v33 = vstv %s2990_s14  ;;  %v356_v38 = vmul.f32 %v355_v14, %v2996_v60  ;;  %s2128_s14 = sshll.u32 %s3344_s24, 3 }
 0x101   : > { %v383_v49 = vmul.f32 %v381_v33, %v3000_v62  ;;  %v382_v21 = vmul.f32 %v381_v33, %v2996_v60  ;;  %v1153_v33 = vmul.f32 %v1151_v9, %v3038_v31  ;;  %s337_s20 = scalar_lea.vmem %s3328_s7, %s2128_s14 }
 0x102   : > { %v358_v5 = vadd.f32 %v356_v38, %v341_v32 }
 0x103   : > { %v387_v22 = vrot.slane %v383_v49, 1  ;;  %v386_v11 = vrot.slane %v382_v21, 1  ;;  %v1137_v49 = vstv %s3060_s21 }
 0x104   : > { %981 = vrot.lane.b32.xlu0 %v977_v12, %s2550_s16  ;;  %1013 = vrot.lane.b32.xlu1 %v1012_v45, %s2550_s16  ;;  %v368_v12 = vmul.f32 %v367_v63, %v2996_v60  ;;  %v374_v45 = vrot.slane %v369_v23, 1  ;;  %v401_v63 = vrot.slane %v396_v37, 2  ;;  %v362_v23 = vmul.f32 %v361_v20, %v2996_v60 }
 0x106   : > { %v379_v14 = vadd.f32 %v374_v45, %v359_v41 }
 0x108   : > { %1060 = vrot.lane.b32.xlu0 %v1056_v46, %s2551_s8  ;;  %1027 = vrot.lane.b32.xlu1 %v1023_v47, %s2551_s8  ;;  %v373_v46 = vrot.slane %v368_v12, 1  ;;  %v408_v47 = vstv %s3003_s18 }
 0x109   : > { %v410_v19 = vmul.f32 %v408_v47, %v3000_v62  ;;  %v409_v12 = vmul.f32 %v408_v47, %v2996_v60  ;;  %v1157_v47 = vrot.slane %v1153_v33, 1 }
 0x10a   : > { %v375_v16 = vsel %vm372_vm0, %v373_v46, %v374_v45 }
 0x10b   : > { %v378_v37 = vadd.f32 %v375_v16, %v358_v5  ;;  %v413_v62 = vrot.slane %v409_v12, 2  ;;  %v1202_v12 = vstv %s3089_s10 }
 0x10c   : > { %1015 = vrot.lane.b32.xlu0 %v1011_v40, %s2550_s16  ;;  %1041 = vrot.lane.b32.xlu1 %v1037_v30, %s2551_s8  ;;  %v1123_v40 = vstv %s2992_s15  ;;  %v1107_v30 = vrot.slane %v3034_v28, 2 }
 0x10d   : > { %v1125_v58 = vmul.f32 %v1123_v40, %v3038_v31 }
 0x110   : > { %1094 = vrot.lane.b32.xlu0 %v1090_v4, %s2551_s8  ;;  %1058 = vrot.lane.b32.xlu1 %v1057_v7, %s2551_s8  ;;  %v400_v7 = vrot.slane %v395_v39, 2  ;;  %v343_v4 = vstv %s3024_s23  ;;  %v388_v39 = vsel %vm372_vm0, %v386_v11, %v387_v22 }
 0x111   : > { %v364_v60 = vadd.f32 %v362_v23, %v343_v4  ;;  %v365_v41 = vadd.f32 %v363_v27, %v343_v4 }
 0x112   : > { %v402_v38 = vsel %vm399_vm1, %v400_v7, %v401_v63 }
 0x113   : > { %v405_v20 = vadd.f32 %v402_v38, %v378_v37  ;;  %v391_v21 = vadd.f32 %v388_v39, %v364_v60  ;;  %v392_v5 = vadd.f32 %v387_v22, %v365_v41  ;;  %v1204_v41 = vmul.f32 %v1202_v12, %v3038_v31 }
 0x114   : > { %1043 = vrot.lane.b32.xlu0 %v1038_v24, %s2551_s8  ;;  %1075 = vrot.lane.b32.xlu1 %v1074_v25, %s2551_s8  ;;  %v1108_v24 = vsel %vm399_vm1, %v1106_v52, %v1107_v30  ;;  %v3076_v25 = vmul.f32 %v2821_v53, %v2679_v2  ;;  %v406_v2 = vadd.f32 %v401_v63, %v379_v14  ;;  %v414_v53 = vrot.slane %v410_v19, 2 }
 0x115   : > { %v1168_v52 = vstv %s3069_s9 }
 0x116   : > { %v1124_v59 = vmul.f32 %v1123_v40, %v3076_v25  ;;  %v433_v63 = vadd.f32 %v2833_v0, %v406_v2  ;;  %v1138_v40 = vmul.f32 %v1137_v49, %v3076_v25  ;;  %v1169_v4 = vmul.f32 %v1168_v52, %v3076_v25 }
 0x117   : > { %v1170_v19 = vmul.f32 %v1168_v52, %v3038_v31  ;;  %v432_v0 = vadd.f32 %v2860_v29, %v405_v20 }
 0x118   : > { %1130 = vrot.lane.b32.xlu0 %v1125_v58, %s2552_s29  ;;  %1092 = vrot.lane.b32.xlu1 %v1091_v50, %s2551_s8  ;;  %v1185_v50 = vstv %s3062_s27  ;;  %v415_v58 = vsel %vm399_vm1, %v413_v62, %v414_v53  ;;  %v464_v22 = vadd.f32 %v2893_v54, %v433_v63  ;;  %v1173_v2 = vrot.slane %v1169_v4, 1 }
 0x119   : > { %v418_v23 = vadd.f32 %v415_v58, %v391_v21  ;;  %v1186_v37 = vmul.f32 %v1185_v50, %v3076_v25  ;;  %v1174_v60 = vrot.slane %v1170_v19, 1  ;;  %v463_v29 = vadd.f32 %v2843_v13, %v432_v0 }
 0x11a   : > { %v3079_v28 = vpop.permute.xlu0 %534  ;;  %v3081_v32 = vpop.permute.xlu1 %532  ;;  %v498_v54 = vadd.f32 %v2869_v36, %v464_v22 }
 0x11c   : > { %1077 = vrot.lane.b32.xlu0 %v1073_v10, %s2551_s8  ;;  %1109 = vrot.lane.b32.xlu1 %v1108_v24, %s2551_s8  ;;  %v1152_v10 = vmul.f32 %v1151_v9, %v3076_v25  ;;  %v1187_v9 = vmul.f32 %v1185_v50, %v3038_v31  ;;  %v419_v24 = vadd.f32 %v414_v53, %v392_v5 }
 0x11d   : > { %v1139_v53 = vmul.f32 %v1137_v49, %v3038_v31  ;;  %v1203_v50 = vmul.f32 %v1202_v12, %v3076_v25  ;;  %v539_v13 = vadd.f32 %v3079_v28, %v498_v54  ;;  %v1208_v31 = vrot.slane %v1204_v41, 2 }
 0x11e   : > { %v3092_v45 = vpop.permute.xlu0 %548  ;;  %v3094_v46 = vpop.permute.xlu1 %546  ;;  %v1156_v16 = vrot.slane %v1152_v10, 1  ;;  %v1191_v33 = vrot.slane %v1187_v9, 2  ;;  %v1190_v10 = vrot.slane %v1186_v37, 2 }
 0x11f   : > { %v1207_v25 = vrot.slane %v1203_v50, 2 }
 0x120   : > { %1161 = vrot.lane.b32.xlu0 %v1157_v47, %s2552_s29  ;;  %1128 = vrot.lane.b32.xlu1 %v1124_v59, %s2552_s29  ;;  %v1158_v38 = vsel %vm372_vm0, %v1156_v16, %v1157_v47  ;;  %v447_v47 = vadd.f32 %v2890_v51, %v419_v24  ;;  %v1175_v59 = vsel %vm372_vm0, %v1173_v2, %v1174_v60 }
 0x121   : > { %v1192_v21 = vsel %vm399_vm1, %v1190_v10, %v1191_v33 }
 0x122   : > { %v636_v7 = vpop.permute.xlu0 %635  ;;  %v3105_v14 = vpop.permute.xlu1 %633  ;;  %v481_v51 = vadd.f32 %v2904_v57, %v447_v47  ;;  %v1209_v57 = vsel %vm399_vm1, %v1207_v25, %v1208_v31 }
 0x124   : > { %1111 = vrot.lane.b32.xlu0 %v1107_v30, %s2551_s8  ;;  %1142 = vrot.lane.b32.xlu1 %v1138_v40, %s2552_s29  ;;  %v446_v30 = vadd.f32 %v2878_v42, %v418_v23  ;;  %v497_v42 = vadd.f32 %v2909_v61, %v463_v29  ;;  %v515_v63 = vadd.f32 %v2915_v6, %v481_v51 }
 0x126   : > { %v650_v11 = vpop.permute.xlu0 %649  ;;  %v648_v27 = vpop.permute.xlu1 %647  ;;  %v480_v36 = vadd.f32 %v2855_v26, %v446_v30  ;;  %v538_v28 = vadd.f32 %v3081_v32, %v497_v42  ;;  %v553_v9 = vadd.f32 %v3092_v45, %v515_v63 }
 0x128   : > { %1195 = vrot.lane.b32.xlu0 %v1191_v33, %s2552_s29  ;;  %1159 = vrot.lane.b32.xlu1 %v1158_v38, %s2552_s29  ;;  %v514_v26 = vadd.f32 %v2919_v8, %v480_v36 }
 0x12a   : > { %v3124_v62 = vpop.permute.xlu0 %832  ;;  %v3126_v39 = vpop.permute.xlu1 %830  ;;  %v552_v16 = vadd.f32 %v3094_v46, %v514_v26 }
 0x12c   : > { %1144 = vrot.lane.b32.xlu0 %v1139_v53, %s2552_s29  ;;  %1176 = vrot.lane.b32.xlu1 %v1175_v59, %s2552_s29 }
 0x12e   : > { %v566_v49 = vpop.permute.xlu0 %565  ;;  %v3137_v52 = vpop.permute.xlu1 %844 }
 0x12f   : > { %v570_v20 = vadd.f32 %v566_v49, %v539_v13 }
 0x130   : > { %1212 = vrot.lane.b32.xlu0 %v1208_v31, %s2552_s29  ;;  %1193 = vrot.lane.b32.xlu1 %v1192_v21, %s2552_s29 }
 0x132   : > { %v600_v58 = vpop.permute.xlu0 %599  ;;  %v564_v61 = vpop.permute.xlu1 %563 }
 0x133   : > { %v604_v5 = vadd.f32 %v600_v58, %v570_v20  ;;  %v569_v40 = vadd.f32 %v564_v61, %v538_v28 }
 0x134   : > { %1210 = vrot.lane.b32.xlu1 %v1209_v57, %s2552_s29 }
 0x135   : > { %v640_v4 = vadd.f32 %v636_v7, %v604_v5 }
 0x136   : > { %v583_v19 = vpop.permute.xlu0 %582  ;;  %v581_v23 = vpop.permute.xlu1 %580 }
 0x137   : > { %v587_v32 = vadd.f32 %v583_v19, %v553_v9  ;;  %v586_v12 = vadd.f32 %v581_v23, %v552_v16 }
 0x138   : > { %1178 = vrot.lane.b32.xlu1 %v1174_v60, %s2552_s29 }
 0x13a   : > { %v667_v8 = vpop.permute.xlu0 %666  ;;  %v598_v0 = vpop.permute.xlu1 %597 }
 0x13b   : > { %v671_v6 = vadd.f32 %v667_v8, %v640_v4  ;;  %v603_v22 = vadd.f32 %v598_v0, %v569_v40 }
 0x13d   : > { %v639_v24 = vadd.f32 %v3105_v14, %v603_v22 }
 0x13e   : > { %v617_v33 = vpop.permute.xlu0 %616  ;;  %v615_v37 = vpop.permute.xlu1 %614 }
 0x13f   : > { %v621_v38 = vadd.f32 %v617_v33, %v587_v32  ;;  %v620_v2 = vadd.f32 %v615_v37, %v586_v12 }
 0x141   : > { %v654_v45 = vadd.f32 %v650_v11, %v621_v38  ;;  %v653_v30 = vadd.f32 %v648_v27, %v620_v2 }
 0x142   : > { %v701_v46 = vpop.permute.xlu0 %700  ;;  %v665_v7 = vpop.permute.xlu1 %664 }
 0x143   : > { %v705_v29 = vadd.f32 %v701_v46, %v671_v6  ;;  %v670_v54 = vadd.f32 %v665_v7, %v639_v24 }
 0x145   : > { %v736_v53 = vadd.f32 %v2927_v17, %v705_v29 }
 0x146   : > { %v684_v41 = vpop.permute.xlu0 %683  ;;  %v682_v60 = vpop.permute.xlu1 %681 }
 0x147   : > { %v767_v47 = vadd.f32 %v2941_v34, %v736_v53  ;;  %v688_v59 = vadd.f32 %v684_v41, %v654_v45  ;;  %v687_v10 = vadd.f32 %v682_v60, %v653_v30 }
 0x149   : > { %v801_v14 = vadd.f32 %v2956_v43, %v767_v47 }
 0x14a   : > { %v718_v50 = vpop.permute.xlu0 %717  ;;  %v699_v13 = vpop.permute.xlu1 %698 }
 0x14b   : > { %v722_v36 = vadd.f32 %v718_v50, %v688_v59  ;;  %v704_v42 = vadd.f32 %v699_v13, %v670_v54  ;;  %v837_v11 = vadd.f32 %v3124_v62, %v801_v14 }
 0x14d   : > { %v750_v27 = vadd.f32 %v2979_v55, %v722_v36  ;;  %v735_v49 = vadd.f32 %v2929_v18, %v704_v42 }
 0x14e   : > { %v864_v31 = vpop.permute.xlu0 %863  ;;  %v716_v17 = vpop.permute.xlu1 %715 }
 0x14f   : > { %v766_v51 = vadd.f32 %v2958_v44, %v735_v49  ;;  %v721_v20 = vadd.f32 %v716_v17, %v687_v10  ;;  %v784_v34 = vadd.f32 %v3013_v1, %v750_v27  ;;  %v868_v37 = vadd.f32 %v864_v31, %v837_v11 }
 0x151   : > { %v749_v21 = vadd.f32 %v2943_v35, %v721_v20  ;;  %v800_v43 = vadd.f32 %v3015_v15, %v766_v51  ;;  %v818_v25 = vadd.f32 %v3049_v3, %v784_v34 }
 0x152   : > { %v898_v28 = vpop.permute.xlu0 %897  ;;  %v862_v26 = vpop.permute.xlu1 %861 }
 0x153   : > { %v783_v62 = vadd.f32 %v2981_v56, %v749_v21  ;;  %v836_v55 = vadd.f32 %v3126_v39, %v800_v43  ;;  %v902_v38 = vadd.f32 %v898_v28, %v868_v37 }
 0x155   : > { %v817_v18 = vadd.f32 %v3051_v48, %v783_v62  ;;  %v867_v54 = vadd.f32 %v862_v26, %v836_v55 }
 0x156   : > { %v847_v58 = vpop.permute.xlu0 %846  ;;  %v879_v61 = vpop.permute.xlu1 %878 }
 0x157   : > { %v851_v44 = vadd.f32 %v847_v58, %v818_v25  ;;  %v850_v63 = vadd.f32 %v3137_v52, %v817_v18 }
 0x159   : > { %v884_v10 = vadd.f32 %v879_v61, %v850_v63 }
 0x15a   : > { %v934_v1 = vpop.permute.xlu0 %933  ;;  %v896_v5 = vpop.permute.xlu1 %895 }
 0x15b   : > { %v938_v30 = vadd.f32 %v934_v1, %v902_v38  ;;  %v901_v41 = vadd.f32 %v896_v5, %v867_v54 }
 0x15e   : > { %v881_v35 = vpop.permute.xlu0 %880  ;;  %v913_v40 = vpop.permute.xlu1 %912 }
 0x15f   : > { %v918_v13 = vadd.f32 %v913_v40, %v884_v10  ;;  %v885_v51 = vadd.f32 %v881_v35, %v851_v44 }
 0x162   : > { %v965_v15 = vpop.permute.xlu0 %964  ;;  %v932_v57 = vpop.permute.xlu1 %931 }
 0x163   : > { %v969_v46 = vadd.f32 %v965_v15, %v938_v30  ;;  %v937_v14 = vadd.f32 %v932_v57, %v901_v41  ;;  %v2005_v30 = vld [vmem:[%s3325_s4] sm:$0xff] }
 0x166   : > { %v915_v3 = vpop.permute.xlu0 %914  ;;  %v946_v9 = vpop.permute.xlu1 %945 }
 0x167   : > { %v951_v49 = vadd.f32 %v946_v9, %v918_v13  ;;  %v919_v28 = vadd.f32 %v915_v3, %v885_v51 }
 0x16a   : > { %v999_v16 = vpop.permute.xlu0 %998  ;;  %v963_v4 = vpop.permute.xlu1 %962 }
 0x16b   : > { %v1003_v53 = vadd.f32 %v999_v16, %v969_v46  ;;  %v968_v36 = vadd.f32 %v963_v4, %v937_v14 }
 0x16e   : > { %v948_v56 = vpop.permute.xlu0 %947  ;;  %v980_v19 = vpop.permute.xlu1 %979 }
 0x16f   : > { %v985_v20 = vadd.f32 %v980_v19, %v951_v49  ;;  %v952_v18 = vadd.f32 %v948_v56, %v919_v28 }
 0x172   : > { %v1030_v39 = vpop.permute.xlu0 %1029  ;;  %v997_v23 = vpop.permute.xlu1 %996 }
 0x173   : > { %v1034_v60 = vadd.f32 %v1030_v39, %v1003_v53  ;;  %v1002_v31 = vadd.f32 %v997_v23, %v968_v36  ;;  %v2553_v39 = vmov 0.0  }
 0x174   : > { %2265 = vmatprep.mubr.msk.f32.mxu0 %vm2555_vm6, %v2553_v39  ;;  %2256 = vmatprep.mubr.msk.f32.mxu1 %vm2555_vm6, %v2553_v39 }
 0x176   : > { %v982_v48 = vpop.permute.xlu0 %981  ;;  %v1014_v32 = vpop.permute.xlu1 %1013 }
 0x177   : > { %v1019_v26 = vadd.f32 %v1014_v32, %v985_v20  ;;  %v986_v1 = vadd.f32 %v982_v48, %v952_v18 }
 0x17a   : > { %v1061_v12 = vpop.permute.xlu0 %1060  ;;  %v1028_v8 = vpop.permute.xlu1 %1027 }
 0x17b   : > { %v1065_v50 = vadd.f32 %v1061_v12, %v1034_v60  ;;  %v1033_v34 = vadd.f32 %v1028_v8, %v1002_v31 }
 0x17e   : > { %v1016_v0 = vpop.permute.xlu0 %1015  ;;  %v1042_v52 = vpop.permute.xlu1 %1041 }
 0x17f   : > { %v1047_v58 = vadd.f32 %v1042_v52, %v1019_v26  ;;  %v1020_v44 = vadd.f32 %v1016_v0, %v986_v1  ;;  %v2554_v52 = vmov 0.0|0.0   ;;  %v2196_v26 = vld [vmem:[%s3324_s3 + $0x20] sm:$0xff] }
 0x180   : > { %2331 = vmatprep.subr.bf16.mxu1 %v2554_v52  ;;  %2334 = vmatprep.subr.bf16.mxu0 %v2554_v52 }
 0x182   : > { %v1095_v6 = vpop.permute.xlu0 %1094  ;;  %v1059_v22 = vpop.permute.xlu1 %1058 }
 0x183   : > { %v1099_v42 = vadd.f32 %v1095_v6, %v1065_v50  ;;  %v1064_v62 = vadd.f32 %v1059_v22, %v1033_v34 }
 0x186   : > { %v1044_v24 = vpop.permute.xlu0 %1043  ;;  %v1076_v33 = vpop.permute.xlu1 %1075 }
 0x187   : > { %v1081_v5 = vadd.f32 %v1076_v33, %v1047_v58  ;;  %v1048_v9 = vadd.f32 %v1044_v24, %v1020_v44  ;;  %v2186_v44 = vld [vmem:[%s3324_s3 + $0x10] sm:$0xff] }
 0x18a   : > { %v1131_v2 = vpop.permute.xlu0 %1130  ;;  %v1093_v45 = vpop.permute.xlu1 %1092 }
 0x18b   : > { %v1135_v17 = vadd.f32 %v1131_v2, %v1099_v42  ;;  %v1098_v61 = vadd.f32 %v1093_v45, %v1064_v62  ;;  %v2559_v45 = vmov 0   ;;  %v1255_v42 = vld [vmem:[%s3324_s3] sm:$0xff] }
 0x18c   : > { %2472 = vset.pattern.permute.xlu1 %v2559_v45  ;;  %2473 = vset.pattern.permute.xlu0 %v2559_v45 }
 0x18e   : > { %v1078_v7 = vpop.permute.xlu0 %1077  ;;  %v1110_v29 = vpop.permute.xlu1 %1109 }
 0x18f   : > { %v1115_v35 = vadd.f32 %v1110_v29, %v1081_v5  ;;  %v1082_v4 = vadd.f32 %v1078_v7, %v1048_v9 }
 0x192   : > { %v1162_v47 = vpop.permute.xlu0 %1161  ;;  %v1129_v59 = vpop.permute.xlu1 %1128 }
 0x193   : > { %v1166_v21 = vadd.f32 %v1162_v47, %v1135_v17  ;;  %v1134_v40 = vadd.f32 %v1129_v59, %v1098_v61  ;;  %v2187_v17 = vld [vmem:[%s3324_s3 + $0x18] sm:$0xff] }
 0x196   : > { %v1112_v11 = vpop.permute.xlu0 %1111  ;;  %v1143_v27 = vpop.permute.xlu1 %1142 }
 0x197   : > { %v1148_v3 = vadd.f32 %v1143_v27, %v1115_v35  ;;  %v1116_v48 = vadd.f32 %v1112_v11, %v1082_v4  ;;  %v2204_v4 = vld [vmem:[%s3324_s3 + $0x38] sm:$0xff] }
 0x19a   : > { %v1196_v43 = vpop.permute.xlu0 %1195  ;;  %v1160_v25 = vpop.permute.xlu1 %1159 }
 0x19b   : > { %v1200_v55 = vadd.f32 %v1196_v43, %v1166_v21  ;;  %v1165_v15 = vadd.f32 %v1160_v25, %v1134_v40  ;;  %v2199_v25 = vld [vmem:[%s3324_s3 + $0x28] sm:$0xff] }
 0x19c   : > { %v2185_v40 = vld [vmem:[%s3324_s3 + $0x8] sm:$0xff] }
 0x19d   : > { %1221 = vst.msk [vmem:[#allocation2 + $0x8] sm:$0xf] %vm1220_vm2, %v1200_v55 }
 0x19e   : > { %v1177_v63 = vpop.permute.xlu1 %1176  ;;  %v1145_v19 = vpop.permute.xlu0 %1144 }
 0x19f   : > { %v1182_v56 = vadd.f32 %v1177_v63, %v1148_v3  ;;  %v1149_v12 = vadd.f32 %v1145_v19, %v1116_v48 }
 0x1a2   : > { %v1194_v57 = vpop.permute.xlu1 %1193  ;;  %v1213_v6 = vpop.permute.xlu0 %1212 }
 0x1a3   : > { %v1199_v16 = vadd.f32 %v1194_v57, %v1165_v15 }
 0x1a5   : > { %1219 = vst.msk [vmem:[#allocation2] sm:$0xff] %vm1218_vm3, %v1199_v16 }
 0x1a6   : > { %1229 = vst.msk [vmem:[#allocation2] sm:$0xff] %vm1228_vm4, %v2553_v39  ;;  %v1211_v23 = vpop.permute.xlu1 %1210 }
 0x1a7   : > { %1233 = vst.msk [vmem:[#allocation2] sm:$0xff] %vm1232_vm5, %v2553_v39  ;;  %v1216_v32 = vadd.f32 %v1211_v23, %v1182_v56  ;;  %v2202_v23 = vld [vmem:[%s3324_s3 + $0x30] sm:$0xff] }
 0x1a9   : > { %1222 = vst.msk [vmem:[#allocation2 + $0xc] sm:$0xff] %vm1218_vm3, %v1216_v32  ;;  %v2206_v32 = vld [vmem:[%s3324_s3 + $0x40] sm:$0xff] }
 0x1aa   : > { %1230 = vst.msk [vmem:[#allocation2 + $0x8] sm:$0xff] %vm1228_vm4, %v2553_v39  ;;  %v1179_v8 = vpop.permute.xlu1 %1178 }
 0x1ab   : > { %1234 = vst.msk [vmem:[#allocation2 + $0x8] sm:$0xff] %vm1232_vm5, %v2553_v39  ;;  %v1183_v0 = vadd.f32 %v1179_v8, %v1149_v12 }
 0x1ad   : > { %v1217_v22 = vadd.f32 %v1213_v6, %v1183_v0 }
 0x1ae   : > { %v3183_v24 = vld [vmem:[#allocation2] sm:$0xff] }
 0x1af   : > { %1223 = vst.msk [vmem:[#allocation2 + $0x14] sm:$0xf] %vm1220_vm2, %v1217_v22 }
 0x1b0   : > { %1231 = vst.msk [vmem:[#allocation2 + $0x10] sm:$0xff] %vm1228_vm4, %v2553_v39 }
 0x1b1   : > { %1235 = vst.msk [vmem:[#allocation2 + $0x10] sm:$0xff] %vm1232_vm5, %v2553_v39 }
 0x1b2   : > { %v3187_v33 = vld [vmem:[#allocation2 + $0x8] sm:$0xff] }
 0x1b3   : > { %v2437_v37 = vpack.i.bf16 %v3187_v33, %v3183_v24  ;;  %v2342_v2 = vpack.c.bf16 %v3187_v33, %v3183_v24 }
 0x1b5   : > { %2438 = vrot.lane.b32.xlu0 %v2437_v37, %s2556_s11  ;;  %2433 = vrot.lane.b32.xlu1 %v2437_v37, %s2557_s12 }
 0x1b8   : > { %v3195_v38 = vld [vmem:[#allocation2 + $0x10] sm:$0xff] }
 0x1b9   : > { %2443 = vrot.lane.b32.xlu0 %v2437_v37, %s2546_s30  ;;  %1246 = vrot.lane.b32.xlu1 %v3195_v38, %s2557_s12 }
 0x1bd   : > { %2448 = vrot.lane.b32.xlu0 %v2437_v37, %s2548_s17  ;;  %1266 = vrot.lane.b32.xlu1 %v3195_v38, %s2556_s11 }
 0x1c1   : > { %2453 = vrot.lane.b32.xlu0 %v2437_v37, %s2545_s19  ;;  %1581 = vrot.lane.b32.xlu1 %v3195_v38, %s2546_s30 }
 0x1c5   : > { %1663 = vrot.lane.b32.xlu0 %v3195_v38, %s2545_s19  ;;  %1424 = vrot.lane.b32.xlu1 %v3195_v38, %s2548_s17 }
 0x1c9   : > { %2463 = vrot.lane.b32.xlu0 %v2437_v37, %s2550_s16  ;;  %2458 = vrot.lane.b32.xlu1 %v2437_v37, %s2558_s13 }
 0x1cd   : > { %1747 = vrot.lane.b32.xlu1 %v3195_v38, %s2558_s13  ;;  %2468 = vrot.lane.b32.xlu0 %v2437_v37, %s2551_s8 }
 0x1d1   : > { %1832 = vrot.lane.b32.xlu1 %v3195_v38, %s2550_s16  ;;  %1915 = vrot.lane.b32.xlu0 %v3195_v38, %s2551_s8 }
 0x1d5   : > { %2008 = vperm.xlu1 %2472, %v2005_v30   ;;  %v2474_v30 = vld [vmem:[%s3326_s5] ss:$0 sm:$0xff] }
 0x227   : > { %v2439_v7 = vpop.permute.xlu0 %2438  ;;  %v2434_v29 = vpop.permute.xlu1 %2433 }
 0x228   : > { %v2441_v54 = vunpack.i.h.bf16 %v2439_v7  ;;  %v2440_v53 = vunpack.i.l.bf16 %v2439_v7  ;;  %v2436_v41 = vunpack.i.h.bf16 %v2434_v29  ;;  %v2435_v60 = vunpack.i.l.bf16 %v2434_v29 }
 0x22a   : > { %v2335_v47 = vpack.c.bf16 %v2436_v41, %v2435_v60  ;;  %v2332_v59 = vpack.c.bf16 %v2441_v54, %v2440_v53  ;;  %v2475_v54 = vld [vmem:[%s3327_s6] ss:$0 sm:$0xff] }
 0x22b   : > { %v2444_v10 = vpop.permute.xlu0 %2443  ;;  %v1247_v14 = vpop.permute.xlu1 %1246 }
 0x22c   : > { %v2446_v50 = vunpack.i.h.bf16 %v2444_v10  ;;  %v2445_v13 = vunpack.i.l.bf16 %v2444_v10  ;;  %2333 = vmatpush3.bf16.msra.mxu1 %v2332_v59  ;;  %2337 = vmatpush3.bf16.msk.msra.mxu0 %vm2336_vm9, %v2335_v47 }
 0x22d   : > { %2254 = vmatprep.subr.mxu1 %v2553_v39  ;;  %2263 = vmatprep.subr.mxu0 %v2553_v39 }
 0x22e   : > { %v2345_v36 = vpack.c.bf16 %v2446_v50, %v2445_v13 }
 0x22f   : > { %v2449_v11 = vpop.permute.xlu0 %2448  ;;  %v1267_v27 = vpop.permute.xlu1 %1266 }
 0x230   : > { %v2451_v49 = vunpack.i.h.bf16 %v2449_v11  ;;  %v2450_v31 = vunpack.i.l.bf16 %v2449_v11  ;;  %2255 = vmatpush3.msra.mxu1 %v1267_v27  ;;  %2264 = vmatpush3.msk.msra.mxu0 %vm3220_vm8, %v1247_v14 }
 0x231   : > { %2344 = vmatprep.subr.bf16.mxu0 %v2554_v52  ;;  %2266 = vmatmul.mubr.msk.f32.vlgmr.msra.gmra.mrb[0].mxu0 %vm1271_vm10, %v1255_v42 }
 0x232   : > { %v2339_v51 = vpack.c.bf16 %v2451_v49, %v2450_v31  ;;  %2346 = vmatpush3.bf16.msra.mxu0 %v2345_v36  ;;  %2338 = vmatprep.subr.bf16.mxu1 %v2554_v52 }
 0x233   : > { %v2454_v20 = vpop.permute.xlu0 %2453  ;;  %v1582_v34 = vpop.permute.xlu1 %1581  ;;  %2257 = vmatmul.mubr.msk.f32.vlgmr.msra.gmra.mrb[0].mxu1 %vm1271_vm10, %v2187_v17  ;;  %2290 = vmatprep.subr.mxu0 %v2553_v39 }
 0x234   : > { %v2456_v21 = vunpack.i.h.bf16 %v2454_v20  ;;  %v2455_v43 = vunpack.i.l.bf16 %v2454_v20  ;;  %2340 = vmatpush3.bf16.msra.mxu1 %v2339_v51  ;;  %2292 = vmatprep.mubr.msk.f32.mxu0 %vm2555_vm6, %v2553_v39 }
 0x235   : > { %2272 = vmatprep.subr.mxu1 %v2553_v39  ;;  %2274 = vmatprep.mubr.msk.f32.mxu1 %vm2555_vm6, %v2553_v39 }
 0x236   : > { %v2348_v28 = vpack.c.bf16 %v2456_v21, %v2455_v43  ;;  %2291 = vmatpush3.msra.mxu0 %v1582_v34 }
 0x237   : > { %v1664_v62 = vpop.permute.xlu0 %1663  ;;  %v1425_v55 = vpop.permute.xlu1 %1424  ;;  %2347 = vmatprep.subr.bf16.mxu0 %v2554_v52  ;;  %2293 = vmatmul.mubr.msk.f32.vlgmr.msra.gmra.mrb[2].mxu0 %vm1271_vm10, %v2199_v25 }
 0x238   : > { %2273 = vmatpush3.msra.mxu1 %v1425_v55  ;;  %2349 = vmatpush3.bf16.msra.mxu0 %v2348_v28 }
 0x239   : > { %2341 = vmatprep.subr.bf16.mxu1 %v2554_v52  ;;  %2275 = vmatmul.mubr.msk.f32.vlgmr.msra.gmra.mrb[2].mxu1 %vm1271_vm10, %v2196_v26 }
 0x23a   : > { %2343 = vmatpush3.bf16.msra.mxu1 %v2342_v2  ;;  %2299 = vmatprep.subr.mxu0 %v2553_v39 }
 0x23b   : > { %v2464_v18 = vpop.permute.xlu0 %2463  ;;  %v2459_v58 = vpop.permute.xlu1 %2458  ;;  %2281 = vmatprep.subr.mxu1 %v2553_v39  ;;  %2283 = vmatprep.mubr.msk.f32.mxu1 %vm2555_vm6, %v2553_v39 }
 0x23c   : > { %v2466_v61 = vunpack.i.h.bf16 %v2464_v18  ;;  %v2465_v63 = vunpack.i.l.bf16 %v2464_v18  ;;  %v2461_v1 = vunpack.i.h.bf16 %v2459_v58  ;;  %v2460_v5 = vunpack.i.l.bf16 %v2459_v58  ;;  %2300 = vmatpush3.msra.mxu0 %v1664_v62  ;;  %2301 = vmatprep.mubr.msk.f32.mxu0 %vm2555_vm6, %v2553_v39 }
 0x23d   : > { %2350 = vmatprep.subr.bf16.mxu0 %v2554_v52 }
 0x23e   : > { %v2354_v35 = vpack.c.bf16 %v2466_v61, %v2465_v63  ;;  %v2351_v15 = vpack.c.bf16 %v2461_v1, %v2460_v5  ;;  %2282 = vmatpush3.msra.mxu1 %v3195_v38 }
 0x23f   : > { %v1748_v57 = vpop.permute.xlu1 %1747  ;;  %2284 = vmatmul.mubr.msk.f32.vlgmr.msra.gmra.mrb[4].mxu1 %vm1271_vm10, %v2185_v40  ;;  %2353 = vmatprep.subr.bf16.mxu1 %v2554_v52  ;;  %v2469_v9 = vpop.permute.xlu0 %2468 }
 0x240   : > { %2302 = vmatmul.mubr.msk.f32.vlgmr.msra.gmra.mrb[2].mxu0 %vm1271_vm10, %v2186_v44  ;;  %2355 = vmatpush3.bf16.msra.mxu1 %v2354_v35  ;;  %v2471_v3 = vunpack.i.h.bf16 %v2469_v9  ;;  %v2470_v16 = vunpack.i.l.bf16 %v2469_v9 }
 0x241   : > { %2352 = vmatpush3.bf16.msra.mxu0 %v2351_v15  ;;  %2317 = vmatprep.subr.mxu1 %v2553_v39 }
 0x242   : > { %2308 = vmatprep.subr.mxu0 %v2553_v39  ;;  %2310 = vmatprep.mubr.msk.f32.mxu0 %vm2555_vm6, %v2553_v39  ;;  %v2357_v56 = vpack.c.bf16 %v2471_v3, %v2470_v16 }
 0x243   : > { %v1833_v19 = vpop.permute.xlu1 %1832  ;;  %2319 = vmatprep.mubr.msk.f32.mxu1 %vm2555_vm6, %v2553_v39  ;;  %v1916_v48 = vpop.permute.xlu0 %1915 }
 0x244   : > { %2318 = vmatpush3.msra.mxu1 %v1833_v19 }
 0x245   : > { %2309 = vmatpush3.msra.mxu0 %v1748_v57  ;;  %2320 = vmatmul.mubr.msk.f32.vlgmr.msra.gmra.mrb[6].mxu1 %vm1271_vm10, %v2204_v4 }
 0x246   : > { %2311 = vmatmul.mubr.msk.f32.vlgmr.msra.gmra.mrb[0].mxu0 %vm1271_vm10, %v2202_v23  ;;  %2356 = vmatprep.subr.bf16.mxu0 %v2554_v52 }
 0x247   : > { %2359 = vmatpush3.bf16.msk.msra.mxu0 %vm2358_vm12, %v2357_v56  ;;  %2328 = vmatprep.mubr.msk.f32.mxu0 %vm2555_vm6, %v2553_v39 }
 0x248   : > { %2326 = vmatprep.subr.mxu0 %v2553_v39 }
 0x24b   : > { %2327 = vmatpush3.msk.msra.mxu0 %vm1920_vm11, %v1916_v48 }
 0x24c   : > { %2329 = vmatmul.mubr.msk.f32.vlgmr.msra.gmra.mrb[2].mxu0 %vm1271_vm10, %v2206_v32 }
 0x254   : > { %v2009_v60 = vpop.permute.xlu1 %2008 }
 0x306   : > { %v1341_v12 = vpop.f32.mrb[0].mxu1 }
 0x307   : > { %v2258_v8 = vpop.f32.mrb[1].mxu1 }
 0x30c   : > { %v1498_v0 = vpop.f32.mrb[2].mxu1 }
 0x30d   : > { %v2276_v6 = vpop.f32.mrb[3].mxu1 }
 0x312   : > { %v1571_v52 = vpop.f32.mrb[4].mxu1 }
 0x313   : > { %v1572_v22 = vadd.f32 %v1571_v52, %v1498_v0  ;;  %v2285_v24 = vpop.f32.mrb[5].mxu1 }
 0x318   : > { %v1906_v33 = vpop.f32.mrb[6].mxu1 }
 0x319   : > { %v1821_v37 = vpop.f32.mrb[0].mxu0  ;;  %v1910_v38 = vadd.f32 %v1906_v33, %v1572_v22  ;;  %v2321_v39 = vpop.f32.mrb[7].mxu1 }
 0x31a   : > { %v2360_v2 = vadd.f32 %v1821_v37, %v1341_v12  ;;  %v2312_v45 = vpop.f32.mrb[1].mxu0 }
 0x31c   : > { %v2000_v46 = vmul.f32 %v2474_v30, %v2360_v2 }
 0x31e   : > { %v2001_v7 = vadd.f32 %v2000_v46, %v1910_v38 }
 0x31f   : > { %v1995_v29 = vpop.f32.mrb[2].mxu0 }
 0x320   : > { %v2003_v53 = vmul.f32 %v2475_v54, %v1995_v29  ;;  %v2330_v41 = vpop.f32.mrb[3].mxu0 }
 0x322   : > { %v2004_v47 = vadd.f32 %v2003_v53, %v2001_v7 }
 0x324   : > { %v2011_v59 = vadd.f32 %v2009_v60, %v2004_v47 }
 0x326   : > { %2013 = vst.msk [vmem:[%s337_s20] sm:$0xff] %vm2012_vm13, %v2011_v59 }
 0x327 PF: > { %s19_s26 = sadd.s32 1, %s2536_s26   ;;  %s3339_s24 = smov %s2532_s25 }
 0x328   : > { %p16_p4 = scmp.ge.s32.totalorder %s19_s26, 4   ;;  %s3340_s25 = smov %s3342_s28 }
 0x32a   :  { %18 = sbr.rel (!%p16_p4) target bundleno = 3 (0x3), region = 99 }
 0x331   :  { %2039 = vsyncpa [#allocation4], 1 }
 0x332   :  { %2041 = vsyncpa [#allocation4 + $0x1], 1 }
 0x333   :  { %2042 = vsyncpa [#allocation6], 1 }

</bundles_post_ra>
